<compile_context>
chip_gen: v6e
topology: v6e:2x2x1
jax: 0.10.0
libtpu: 0.0.40
codegen_flags: <defaults>
</compile_context>

<pallas_src>
import jax
import jax.numpy as jnp
from jax.experimental import pallas as pl
from jax.experimental.pallas import tpu as pltpu


def _attn_decoder_kernel(
    enc_ref,      # (B, T, H)   full encoder outputs (attention keys/values)
    cur_ref,      # (B, S, H)   current tile of decoder-step inputs (S = TILE_T)
    c0_ref,       # (B, H)      initial cell state (reused every step)
    hoist_ref,    # (4, B, H)   h0 @ W_hh^T + b_ih + b_hh, split per gate (i,f,g,o)
    wih_ref,      # (4, H, H)   per-gate input weights (transposed, context half dropped)
    mask_ref,     # (B, T)      float sequence mask
    l1_t_ref,     # (H, H)
    l2a_t_ref,    # (H, H)      l2 half acting on the context
    l2b_t_ref,    # (H, H)      l2 half acting on mem_out
    lin1_t_ref,   # (H, H)
    lin1_b_ref,   # (1, H)
    lin2_t_ref,   # (H, OUT)
    lin2_b_ref,   # (1, OUT)
    scores_ref,   # (B, S, OUT) log-softmax scores for this tile
    attn_ref,     # (B, S, T)   attention weights for this tile
    mem_ref,      # (B, S, H)   mem_out for this tile
):
    f32 = jnp.float32
    B, T, H = enc_ref.shape
    S = cur_ref.shape[1]
    OUT = lin2_t_ref.shape[1]

    # ---- LSTMCell, time tile folded into the matmul M dimension -------------
    cur2 = cur_ref[...].reshape(B * S, H)                       # rows ordered (b, s)
    c0 = c0_ref[...][:, None, :]                                # (B, 1, H)

    def gate(k):
        g = jnp.dot(cur2, wih_ref[k], preferred_element_type=f32).reshape(B, S, H)
        return g + hoist_ref[k][:, None, :]

    i_g = jax.nn.sigmoid(gate(0))
    f_g = jax.nn.sigmoid(gate(1))
    g_g = jnp.tanh(gate(2))
    o_g = jax.nn.sigmoid(gate(3))
    c_new = f_g * c0 + i_g * g_g
    mem = o_g * jnp.tanh(c_new)                                 # (B, S, H)

    # ---- Attention_Module ----------------------------------------------------
    mem2 = mem.reshape(B * S, H)
    xq = jnp.dot(mem2, l1_t_ref[...], preferred_element_type=f32).reshape(B, S, H)

    enc = enc_ref[...]                                          # (B, T, H)
    # batched-over-B MXU contractions (scores over time on the lane axis)
    att = jnp.einsum("bsh,bth->bst", xq, enc, preferred_element_type=f32)

    masked = mask_ref[...][:, None, :] * att
    # NOTE: reference quirk preserved -- also masks valid positions whose raw
    # score is exactly 0.0 (matches `masked_att[masked_att == 0] = -1e10`).
    masked = jnp.where(masked == 0.0, f32(-1e10), masked)
    m = jnp.max(masked, axis=-1, keepdims=True)
    e = jnp.exp(masked - m)
    attn = e * pl.reciprocal(jnp.sum(e, axis=-1, keepdims=True), approx=True)  # (B,S,T)

    ctx = jnp.einsum("bst,bth->bsh", attn, enc, preferred_element_type=f32)    # (B,S,H)

    # tanh(l2([ctx, mem])) without the lane-axis concat
    ctx2 = ctx.reshape(B * S, H)
    ctx_out = jnp.tanh(
        jnp.dot(ctx2, l2a_t_ref[...], preferred_element_type=f32)
        + jnp.dot(mem2, l2b_t_ref[...], preferred_element_type=f32))

    # ---- output head: linear1 -> tanh -> linear2 -> LogSoftmax ---------------
    s1 = jnp.tanh(jnp.dot(ctx_out, lin1_t_ref[...], preferred_element_type=f32)
                  + lin1_b_ref[...])
    s2 = jnp.dot(s1, lin2_t_ref[...], preferred_element_type=f32) + lin2_b_ref[...]
    mm = jnp.max(s2, axis=-1, keepdims=True)
    lse = jnp.log(jnp.sum(jnp.exp(s2 - mm), axis=-1, keepdims=True))
    logp = (s2 - mm - lse).reshape(B, S, OUT)

    scores_ref[...] = logp
    attn_ref[...] = attn
    mem_ref[...] = mem


def init_params(key, hidden_size, output_size):
    H, OUT = hidden_size, output_size
    ks = jax.random.split(key, 10)
    s = 0.1
    return {
        "w_ih": jax.random.normal(ks[0], (4 * H, 2 * H), jnp.float32) * s,
        "w_hh": jax.random.normal(ks[1], (4 * H, H), jnp.float32) * s,
        "b_ih": jax.random.normal(ks[2], (4 * H,), jnp.float32) * s,
        "b_hh": jax.random.normal(ks[3], (4 * H,), jnp.float32) * s,
        "attn_l1_w": jax.random.normal(ks[4], (H, H), jnp.float32) * s,      # bias=False
        "attn_l2_w": jax.random.normal(ks[5], (H, 2 * H), jnp.float32) * s,  # bias=False
        "lin1_w": jax.random.normal(ks[6], (H, H), jnp.float32) * s,
        "lin1_b": jax.random.normal(ks[7], (H,), jnp.float32) * s,
        "lin2_w": jax.random.normal(ks[8], (OUT, H), jnp.float32) * s,
        "lin2_b": jax.random.normal(ks[9], (OUT,), jnp.float32) * s,
    }


def attn_decoder_forward(params, memory, encoder_output, xs_len, *, tile_t=None):
    """memory = (h, c) each (1, B, H); encoder_output: (B, T, H); xs_len: (B,) int32."""
    h0 = memory[0][0].astype(jnp.float32)                      # (B, H)
    c0 = memory[1][0].astype(jnp.float32)                      # (B, H)
    enc = encoder_output.astype(jnp.float32)                   # (B, T, H), kept batch-first
    B, T, H = enc.shape
    OUT = params["lin2_w"].shape[0]

    if tile_t is None:
        tile_t = T if (T <= 8 or T % 8 != 0) else 8
    assert T % tile_t == 0, "T must be divisible by tile_t"
    n_tiles = T // tile_t

    # ---- loop-invariant hoists (computed once, outside the kernel) ----------
    hoist = h0 @ params["w_hh"].T + params["b_ih"][None, :] + params["b_hh"][None, :]
    hoist4 = jnp.transpose(hoist.reshape(B, 4, H), (1, 0, 2))                  # (4, B, H)
    # zero-context half of w_ih multiplies zeros -> dropped; per-gate split keeps
    # gate activations 128-lane aligned (no sub-tile slicing in the kernel).
    wih4_t = jnp.transpose(params["w_ih"][:, :H].reshape(4, H, H), (0, 2, 1))  # (4, H, H)
    l1_t = params["attn_l1_w"].T                               # (H, H)
    l2a_t = params["attn_l2_w"][:, :H].T                       # (H, H)  ctx half
    l2b_t = params["attn_l2_w"][:, H:].T                       # (H, H)  mem half
    lin1_t = params["lin1_w"].T                                # (H, H)
    lin1_b = params["lin1_b"][None, :]                         # (1, H)
    lin2_t = params["lin2_w"].T                                # (H, OUT)
    lin2_b = params["lin2_b"][None, :]                         # (1, OUT)
    mask = (jnp.arange(T, dtype=jnp.int32)[None, :]
            < xs_len.astype(jnp.int32)[:, None]).astype(jnp.float32)           # (B, T)

    inputs = (enc, enc, c0, hoist4, wih4_t, mask,
              l1_t, l2a_t, l2b_t, lin1_t, lin1_b, lin2_t, lin2_b)

    def const_spec(shape):
        nd = len(shape)
        return pl.BlockSpec(shape, lambda i, _nd=nd: (0,) * _nd)

    in_specs = [
        const_spec(enc.shape),                                  # full encoder (attention)
        pl.BlockSpec((B, tile_t, H), lambda i: (0, i, 0)),      # current time tile (LSTM in)
        const_spec(c0.shape),
        const_spec(hoist4.shape),
        const_spec(wih4_t.shape),
        const_spec(mask.shape),
        const_spec(l1_t.shape),
        const_spec(l2a_t.shape),
        const_spec(l2b_t.shape),
        const_spec(lin1_t.shape),
        const_spec(lin1_b.shape),
        const_spec(lin2_t.shape),
        const_spec(lin2_b.shape),
    ]
    out_shapes = (
        jax.ShapeDtypeStruct((B, T, OUT), jnp.float32),         # log-softmax scores, batch-first
        jax.ShapeDtypeStruct((B, T, T), jnp.float32),           # attention weights, lane = enc time
        jax.ShapeDtypeStruct((B, T, H), jnp.float32),           # mem_out for every step
    )
    out_specs = (
        pl.BlockSpec((B, tile_t, OUT), lambda i: (0, i, 0)),
        pl.BlockSpec((B, tile_t, T), lambda i: (0, i, 0)),
        pl.BlockSpec((B, tile_t, H), lambda i: (0, i, 0)),
    )

    scores_bf, attn_all, mem_all = pl.pallas_call(
        _attn_decoder_kernel,
        grid=(n_tiles,),
        in_specs=in_specs,
        out_specs=out_specs,
        out_shape=out_shapes,
        # steps are independent and every output write is a disjoint tile, so the
        # time-tile axis can be sharded across TensorCores (v7x) deterministically.
        compiler_params=pltpu.CompilerParams(dimension_semantics=("parallel",)),
    )(*inputs)

    return_scores = scores_bf                                   # (B, T, OUT)
    memory_out = mem_all[:, T - 1, :][None]                     # (1, B, H): last-step mem_out
    attn_tb = jnp.transpose(attn_all, (1, 2, 0))                # (step, enc_t, B) -- layout plumbing
    attn_wts_list = [attn_tb[t] for t in range(T)]              # list of (T, B), as in reference
    context_vec = jnp.zeros((B, H), jnp.float32)                # never updated in reference
    return return_scores, memory_out, attn_wts_list, context_vec


def attn_decoder_reference(params, memory, encoder_output, xs_len):
    """Pure-JAX reference implementing the same (repaired) semantics."""
    h0 = memory[0][0]
    c0 = memory[1][0]
    enc = jnp.transpose(encoder_output, (1, 0, 2))              # (T, B, H)
    T, B, H = enc.shape
    scores_list, attn_list = [], []
    last_mem = h0
    for t in range(T):
        cur = enc[t]
        x_in = jnp.concatenate([cur, jnp.zeros_like(cur)], axis=1)
        gates = (x_in @ params["w_ih"].T + params["b_ih"]
                 + h0 @ params["w_hh"].T + params["b_hh"])
        i_g = jax.nn.sigmoid(gates[:, :H])
        f_g = jax.nn.sigmoid(gates[:, H:2 * H])
        g_g = jnp.tanh(gates[:, 2 * H:3 * H])
        o_g = jax.nn.sigmoid(gates[:, 3 * H:])
        c_new = f_g * c0 + i_g * g_g
        mem_out = o_g * jnp.tanh(c_new)
        xq = mem_out @ params["attn_l1_w"].T
        att = jnp.einsum("tbh,bh->tb", enc, xq)
        seq_mask = (jnp.arange(T)[:, None] < xs_len[None, :]).astype(jnp.float32)
        masked = seq_mask * att
        masked = jnp.where(masked == 0.0, -1e10, masked)
        attn_sc = jax.nn.softmax(masked, axis=0)
        ctx = jnp.einsum("tb,tbh->bh", attn_sc, enc)
        ctx_out = jnp.tanh(jnp.concatenate([ctx, mem_out], axis=1) @ params["attn_l2_w"].T)
        s1 = jnp.tanh(ctx_out @ params["lin1_w"].T + params["lin1_b"])
        s2 = s1 @ params["lin2_w"].T + params["lin2_b"]
        scores_list.append(jax.nn.log_softmax(s2, axis=1))
        attn_list.append(attn_sc)
        last_mem = mem_out
    return (jnp.stack(scores_list).transpose(1, 0, 2), last_mem[None],
            attn_list, jnp.zeros((B, H), jnp.float32))


if __name__ == "__main__":
    B, T, H, OUT = 4, 16, 32, 16

    key = jax.random.PRNGKey(0)
    kp, kh, kc, ke = jax.random.split(key, 4)
    params = init_params(kp, H, OUT)

    h = jax.random.normal(kh, (1, B, H), jnp.float32) * 0.5
    c = jax.random.normal(kc, (1, B, H), jnp.float32) * 0.5
    encoder_output = jax.random.normal(ke, (B, T, H), jnp.float32)
    xs_len = jnp.array([T, 5, 12, 3], dtype=jnp.int32)

    fwd = jax.jit(attn_decoder_forward)
    scores, mem, attn_list, ctx = fwd(params, (h, c), encoder_output, xs_len)
    jax.block_until_ready((scores, mem, attn_list, ctx))

    # correctness check against the pure-JAX reference
    # (tolerance leaves margin for MXU f32 pass precision + approx reciprocal)
    ref_scores, ref_mem, ref_attn, _ = attn_decoder_reference(params, (h, c), encoder_output, xs_len)
    assert scores.shape == (B, T, OUT) and mem.shape == (1, B, H) and ctx.shape == (B, H)
    assert len(attn_list) == T and attn_list[0].shape == (T, B)
    assert jnp.max(jnp.abs(scores - ref_scores)) < 1e-2
    assert jnp.max(jnp.abs(mem - ref_mem)) < 1e-2
    assert jnp.max(jnp.abs(jnp.stack(attn_list) - jnp.stack(ref_attn))) < 1e-2

    print("KERNEL_OK")
</pallas_src>

<mosaic_0001>
module attributes {stable_mosaic.version = 11 : i64} {
  func.func @_attn_decoder_kernel(%arg0: i32, %arg1: memref<4x16x32xf32, #tpu.memory_space<vmem>>, %arg2: memref<4x8x32xf32, #tpu.memory_space<vmem>>, %arg3: memref<4x32xf32, #tpu.memory_space<vmem>>, %arg4: memref<4x4x32xf32, #tpu.memory_space<vmem>>, %arg5: memref<4x32x32xf32, #tpu.memory_space<vmem>>, %arg6: memref<4x16xf32, #tpu.memory_space<vmem>>, %arg7: memref<32x32xf32, #tpu.memory_space<vmem>>, %arg8: memref<32x32xf32, #tpu.memory_space<vmem>>, %arg9: memref<32x32xf32, #tpu.memory_space<vmem>>, %arg10: memref<32x32xf32, #tpu.memory_space<vmem>>, %arg11: memref<1x32xf32, #tpu.memory_space<vmem>>, %arg12: memref<32x16xf32, #tpu.memory_space<vmem>>, %arg13: memref<1x16xf32, #tpu.memory_space<vmem>>, %arg14: memref<4x8x16xf32, #tpu.memory_space<vmem>>, %arg15: memref<4x8x16xf32, #tpu.memory_space<vmem>>, %arg16: memref<4x8x32xf32, #tpu.memory_space<vmem>>) attributes {dimension_semantics = [#tpu.dimension_semantics<parallel>], iteration_bounds = array<i64: 2>, scalar_prefetch = 0 : i64, scratch_operands = 0 : i64, tpu.core_type = #tpu.core_type<tc>, window_params = [{pipeline_mode = #tpu.pipeline_mode<synchronous>, transform_indices = @transform_0, window_bounds = array<i64: 4, 16, 32>}, {transform_indices = @transform_1, window_bounds = array<i64: 4, 8, 32>}, {pipeline_mode = #tpu.pipeline_mode<synchronous>, transform_indices = @transform_2, window_bounds = array<i64: 4, 32>}, {pipeline_mode = #tpu.pipeline_mode<synchronous>, transform_indices = @transform_3, window_bounds = array<i64: 4, 4, 32>}, {pipeline_mode = #tpu.pipeline_mode<synchronous>, transform_indices = @transform_4, window_bounds = array<i64: 4, 32, 32>}, {pipeline_mode = #tpu.pipeline_mode<synchronous>, transform_indices = @transform_5, window_bounds = array<i64: 4, 16>}, {pipeline_mode = #tpu.pipeline_mode<synchronous>, transform_indices = @transform_6, window_bounds = array<i64: 32, 32>}, {pipeline_mode = #tpu.pipeline_mode<synchronous>, transform_indices = @transform_7, window_bounds = array<i64: 32, 32>}, {pipeline_mode = #tpu.pipeline_mode<synchronous>, transform_indices = @transform_8, window_bounds = array<i64: 32, 32>}, {pipeline_mode = #tpu.pipeline_mode<synchronous>, transform_indices = @transform_9, window_bounds = array<i64: 32, 32>}, {pipeline_mode = #tpu.pipeline_mode<synchronous>, transform_indices = @transform_10, window_bounds = array<i64: 1, 32>}, {pipeline_mode = #tpu.pipeline_mode<synchronous>, transform_indices = @transform_11, window_bounds = array<i64: 32, 16>}, {pipeline_mode = #tpu.pipeline_mode<synchronous>, transform_indices = @transform_12, window_bounds = array<i64: 1, 16>}, {transform_indices = @transform_13, window_bounds = array<i64: 4, 8, 16>}, {transform_indices = @transform_14, window_bounds = array<i64: 4, 8, 16>}, {transform_indices = @transform_15, window_bounds = array<i64: 4, 8, 32>}]} {
    %c0 = arith.constant 0 : index
    %c0_0 = arith.constant 0 : index
    %c0_1 = arith.constant 0 : index
    %0 = vector.load %arg2[%c0, %c0_0, %c0_1] : memref<4x8x32xf32, #tpu.memory_space<vmem>>, vector<4x8x32xf32>
    %1 = vector.shape_cast %0 : vector<4x8x32xf32> to vector<32x32xf32>
    %c0_2 = arith.constant 0 : index
    %c0_3 = arith.constant 0 : index
    %2 = vector.load %arg3[%c0_2, %c0_3] : memref<4x32xf32, #tpu.memory_space<vmem>>, vector<4x32xf32>
    %3 = vector.shape_cast %2 : vector<4x32xf32> to vector<4x1x32xf32>
    %c0_4 = arith.constant 0 : index
    %c0_5 = arith.constant 0 : index
    %c0_6 = arith.constant 0 : index
    %4 = vector.load %arg5[%c0_4, %c0_5, %c0_6] : memref<4x32x32xf32, #tpu.memory_space<vmem>>, vector<1x32x32xf32>
    %5 = vector.shape_cast %4 : vector<1x32x32xf32> to vector<32x32xf32>
    %cst = arith.constant dense<0.000000e+00> : vector<32x32xf32>
    %6 = tpu.matmul %1, %5, %cst {dimension_numbers = #tpu.dot_dimension_numbers<[1], [0], [0], [1], [0, 0, 1, 1], [], []>} : vector<32x32xf32>, vector<32x32xf32>, vector<32x32xf32> -> vector<32x32xf32>
    %7 = vector.shape_cast %6 : vector<32x32xf32> to vector<4x8x32xf32>
    %c0_7 = arith.constant 0 : index
    %c0_8 = arith.constant 0 : index
    %c0_9 = arith.constant 0 : index
    %8 = vector.load %arg4[%c0_7, %c0_8, %c0_9] : memref<4x4x32xf32, #tpu.memory_space<vmem>>, vector<1x4x32xf32>
    %9 = vector.shape_cast %8 : vector<1x4x32xf32> to vector<4x32xf32>
    %10 = vector.shape_cast %9 : vector<4x32xf32> to vector<4x1x32xf32>
    %11 = vector.broadcast %10 : vector<4x1x32xf32> to vector<4x8x32xf32>
    %12 = arith.addf %7, %11 : vector<4x8x32xf32>
    %13 = arith.negf %12 : vector<4x8x32xf32>
    %14 = math.exp %13 : vector<4x8x32xf32>
    %cst_10 = arith.constant 1.000000e+00 : f32
    %15 = vector.broadcast %cst_10 : f32 to vector<4x8x32xf32>
    %16 = arith.addf %15, %14 : vector<4x8x32xf32>
    %17 = arith.divf %15, %16 : vector<4x8x32xf32>
    %c1 = arith.constant 1 : index
    %c0_11 = arith.constant 0 : index
    %c0_12 = arith.constant 0 : index
    %18 = vector.load %arg5[%c1, %c0_11, %c0_12] : memref<4x32x32xf32, #tpu.memory_space<vmem>>, vector<1x32x32xf32>
    %19 = vector.shape_cast %18 : vector<1x32x32xf32> to vector<32x32xf32>
    %cst_13 = arith.constant dense<0.000000e+00> : vector<32x32xf32>
    %20 = tpu.matmul %1, %19, %cst_13 {dimension_numbers = #tpu.dot_dimension_numbers<[1], [0], [0], [1], [0, 0, 1, 1], [], []>} : vector<32x32xf32>, vector<32x32xf32>, vector<32x32xf32> -> vector<32x32xf32>
    %21 = vector.shape_cast %20 : vector<32x32xf32> to vector<4x8x32xf32>
    %c1_14 = arith.constant 1 : index
    %c0_15 = arith.constant 0 : index
    %c0_16 = arith.constant 0 : index
    %22 = vector.load %arg4[%c1_14, %c0_15, %c0_16] : memref<4x4x32xf32, #tpu.memory_space<vmem>>, vector<1x4x32xf32>
    %23 = vector.shape_cast %22 : vector<1x4x32xf32> to vector<4x32xf32>
    %24 = vector.shape_cast %23 : vector<4x32xf32> to vector<4x1x32xf32>
    %25 = vector.broadcast %24 : vector<4x1x32xf32> to vector<4x8x32xf32>
    %26 = arith.addf %21, %25 : vector<4x8x32xf32>
    %27 = arith.negf %26 : vector<4x8x32xf32>
    %28 = math.exp %27 : vector<4x8x32xf32>
    %cst_17 = arith.constant 1.000000e+00 : f32
    %29 = vector.broadcast %cst_17 : f32 to vector<4x8x32xf32>
    %30 = arith.addf %29, %28 : vector<4x8x32xf32>
    %31 = arith.divf %29, %30 : vector<4x8x32xf32>
    %c2 = arith.constant 2 : index
    %c0_18 = arith.constant 0 : index
    %c0_19 = arith.constant 0 : index
    %32 = vector.load %arg5[%c2, %c0_18, %c0_19] : memref<4x32x32xf32, #tpu.memory_space<vmem>>, vector<1x32x32xf32>
    %33 = vector.shape_cast %32 : vector<1x32x32xf32> to vector<32x32xf32>
    %cst_20 = arith.constant dense<0.000000e+00> : vector<32x32xf32>
    %34 = tpu.matmul %1, %33, %cst_20 {dimension_numbers = #tpu.dot_dimension_numbers<[1], [0], [0], [1], [0, 0, 1, 1], [], []>} : vector<32x32xf32>, vector<32x32xf32>, vector<32x32xf32> -> vector<32x32xf32>
    %35 = vector.shape_cast %34 : vector<32x32xf32> to vector<4x8x32xf32>
    %c2_21 = arith.constant 2 : index
    %c0_22 = arith.constant 0 : index
    %c0_23 = arith.constant 0 : index
    %36 = vector.load %arg4[%c2_21, %c0_22, %c0_23] : memref<4x4x32xf32, #tpu.memory_space<vmem>>, vector<1x4x32xf32>
    %37 = vector.shape_cast %36 : vector<1x4x32xf32> to vector<4x32xf32>
    %38 = vector.shape_cast %37 : vector<4x32xf32> to vector<4x1x32xf32>
    %39 = vector.broadcast %38 : vector<4x1x32xf32> to vector<4x8x32xf32>
    %40 = arith.addf %35, %39 : vector<4x8x32xf32>
    %41 = math.tanh %40 : vector<4x8x32xf32>
    %c3 = arith.constant 3 : index
    %c0_24 = arith.constant 0 : index
    %c0_25 = arith.constant 0 : index
    %42 = vector.load %arg5[%c3, %c0_24, %c0_25] : memref<4x32x32xf32, #tpu.memory_space<vmem>>, vector<1x32x32xf32>
    %43 = vector.shape_cast %42 : vector<1x32x32xf32> to vector<32x32xf32>
    %cst_26 = arith.constant dense<0.000000e+00> : vector<32x32xf32>
    %44 = tpu.matmul %1, %43, %cst_26 {dimension_numbers = #tpu.dot_dimension_numbers<[1], [0], [0], [1], [0, 0, 1, 1], [], []>} : vector<32x32xf32>, vector<32x32xf32>, vector<32x32xf32> -> vector<32x32xf32>
    %45 = vector.shape_cast %44 : vector<32x32xf32> to vector<4x8x32xf32>
    %c3_27 = arith.constant 3 : index
    %c0_28 = arith.constant 0 : index
    %c0_29 = arith.constant 0 : index
    %46 = vector.load %arg4[%c3_27, %c0_28, %c0_29] : memref<4x4x32xf32, #tpu.memory_space<vmem>>, vector<1x4x32xf32>
    %47 = vector.shape_cast %46 : vector<1x4x32xf32> to vector<4x32xf32>
    %48 = vector.shape_cast %47 : vector<4x32xf32> to vector<4x1x32xf32>
    %49 = vector.broadcast %48 : vector<4x1x32xf32> to vector<4x8x32xf32>
    %50 = arith.addf %45, %49 : vector<4x8x32xf32>
    %51 = arith.negf %50 : vector<4x8x32xf32>
    %52 = math.exp %51 : vector<4x8x32xf32>
    %cst_30 = arith.constant 1.000000e+00 : f32
    %53 = vector.broadcast %cst_30 : f32 to vector<4x8x32xf32>
    %54 = arith.addf %53, %52 : vector<4x8x32xf32>
    %55 = arith.divf %53, %54 : vector<4x8x32xf32>
    %56 = vector.broadcast %3 : vector<4x1x32xf32> to vector<4x8x32xf32>
    %57 = arith.mulf %31, %56 : vector<4x8x32xf32>
    %58 = arith.mulf %17, %41 : vector<4x8x32xf32>
    %59 = arith.addf %57, %58 : vector<4x8x32xf32>
    %60 = math.tanh %59 : vector<4x8x32xf32>
    %61 = arith.mulf %55, %60 : vector<4x8x32xf32>
    %62 = vector.shape_cast %61 : vector<4x8x32xf32> to vector<32x32xf32>
    %c0_31 = arith.constant 0 : index
    %c0_32 = arith.constant 0 : index
    %63 = vector.load %arg7[%c0_31, %c0_32] : memref<32x32xf32, #tpu.memory_space<vmem>>, vector<32x32xf32>
    %cst_33 = arith.constant dense<0.000000e+00> : vector<32x32xf32>
    %64 = tpu.matmul %62, %63, %cst_33 {dimension_numbers = #tpu.dot_dimension_numbers<[1], [0], [0], [1], [0, 0, 1, 1], [], []>} : vector<32x32xf32>, vector<32x32xf32>, vector<32x32xf32> -> vector<32x32xf32>
    %65 = vector.shape_cast %64 : vector<32x32xf32> to vector<4x8x32xf32>
    %c0_34 = arith.constant 0 : index
    %c0_35 = arith.constant 0 : index
    %c0_36 = arith.constant 0 : index
    %66 = vector.load %arg1[%c0_34, %c0_35, %c0_36] : memref<4x16x32xf32, #tpu.memory_space<vmem>>, vector<4x16x32xf32>
    "tpu.trace_start"() <{level = 10 : i32, message = "bsh,bth->bst"}> : () -> ()
    %cst_37 = arith.constant dense<0.000000e+00> : vector<4x8x16xf32>
    %67 = tpu.matmul %65, %66, %cst_37 {dimension_numbers = #tpu.dot_dimension_numbers<[2], [2], [1], [1], [0, 0, 0, 1, 1, 1], [0], [0]>} : vector<4x8x32xf32>, vector<4x16x32xf32>, vector<4x8x16xf32> -> vector<4x8x16xf32>
    "tpu.trace_stop"() : () -> ()
    %c0_38 = arith.constant 0 : index
    %c0_39 = arith.constant 0 : index
    %68 = vector.load %arg6[%c0_38, %c0_39] : memref<4x16xf32, #tpu.memory_space<vmem>>, vector<4x16xf32>
    %69 = vector.shape_cast %68 : vector<4x16xf32> to vector<4x1x16xf32>
    %70 = vector.broadcast %69 : vector<4x1x16xf32> to vector<4x8x16xf32>
    %71 = arith.mulf %70, %67 : vector<4x8x16xf32>
    %cst_40 = arith.constant 0.000000e+00 : f32
    %72 = vector.broadcast %cst_40 : f32 to vector<4x8x16xf32>
    %73 = arith.cmpf oeq, %71, %72 : vector<4x8x16xf32>
    %cst_41 = arith.constant -1.000000e+10 : f32
    %74 = vector.broadcast %cst_41 : f32 to vector<4x8x16xf32>
    %75 = arith.select %73, %74, %71 : vector<4x8x16xi1>, vector<4x8x16xf32>
    %cst_42 = arith.constant dense<0xFF800000> : vector<4x8xf32>
    %76 = vector.multi_reduction <maximumf>, %75, %cst_42 [2] : vector<4x8x16xf32> to vector<4x8xf32>
    %77 = vector.shape_cast %76 : vector<4x8xf32> to vector<4x8x1xf32>
    %78 = vector.broadcast %77 : vector<4x8x1xf32> to vector<4x8x16xf32>
    %79 = arith.subf %75, %78 : vector<4x8x16xf32>
    %80 = math.exp %79 : vector<4x8x16xf32>
    %cst_43 = arith.constant dense<0.000000e+00> : vector<4x8xf32>
    %81 = vector.multi_reduction <add>, %80, %cst_43 [2] : vector<4x8x16xf32> to vector<4x8xf32>
    %82 = vector.shape_cast %81 : vector<4x8xf32> to vector<4x8x1xf32>
    %83 = tpu.reciprocal %82 {approx = true} : vector<4x8x1xf32> -> vector<4x8x1xf32>
    %84 = vector.broadcast %83 : vector<4x8x1xf32> to vector<4x8x16xf32>
    %85 = arith.mulf %80, %84 : vector<4x8x16xf32>
    "tpu.trace_start"() <{level = 10 : i32, message = "bst,bth->bsh"}> : () -> ()
    %cst_44 = arith.constant dense<0.000000e+00> : vector<4x8x32xf32>
    %86 = tpu.matmul %85, %66, %cst_44 {dimension_numbers = #tpu.dot_dimension_numbers<[2], [1], [1], [2], [0, 0, 0, 1, 1, 2], [0], [0]>} : vector<4x8x16xf32>, vector<4x16x32xf32>, vector<4x8x32xf32> -> vector<4x8x32xf32>
    "tpu.trace_stop"() : () -> ()
    %87 = vector.shape_cast %86 : vector<4x8x32xf32> to vector<32x32xf32>
    %c0_45 = arith.constant 0 : index
    %c0_46 = arith.constant 0 : index
    %88 = vector.load %arg8[%c0_45, %c0_46] : memref<32x32xf32, #tpu.memory_space<vmem>>, vector<32x32xf32>
    %cst_47 = arith.constant dense<0.000000e+00> : vector<32x32xf32>
    %89 = tpu.matmul %87, %88, %cst_47 {dimension_numbers = #tpu.dot_dimension_numbers<[1], [0], [0], [1], [0, 0, 1, 1], [], []>} : vector<32x32xf32>, vector<32x32xf32>, vector<32x32xf32> -> vector<32x32xf32>
    %c0_48 = arith.constant 0 : index
    %c0_49 = arith.constant 0 : index
    %90 = vector.load %arg9[%c0_48, %c0_49] : memref<32x32xf32, #tpu.memory_space<vmem>>, vector<32x32xf32>
    %cst_50 = arith.constant dense<0.000000e+00> : vector<32x32xf32>
    %91 = tpu.matmul %62, %90, %cst_50 {dimension_numbers = #tpu.dot_dimension_numbers<[1], [0], [0], [1], [0, 0, 1, 1], [], []>} : vector<32x32xf32>, vector<32x32xf32>, vector<32x32xf32> -> vector<32x32xf32>
    %92 = arith.addf %89, %91 : vector<32x32xf32>
    %93 = math.tanh %92 : vector<32x32xf32>
    %c0_51 = arith.constant 0 : index
    %c0_52 = arith.constant 0 : index
    %94 = vector.load %arg10[%c0_51, %c0_52] : memref<32x32xf32, #tpu.memory_space<vmem>>, vector<32x32xf32>
    %cst_53 = arith.constant dense<0.000000e+00> : vector<32x32xf32>
    %95 = tpu.matmul %93, %94, %cst_53 {dimension_numbers = #tpu.dot_dimension_numbers<[1], [0], [0], [1], [0, 0, 1, 1], [], []>} : vector<32x32xf32>, vector<32x32xf32>, vector<32x32xf32> -> vector<32x32xf32>
    %c0_54 = arith.constant 0 : index
    %c0_55 = arith.constant 0 : index
    %96 = vector.load %arg11[%c0_54, %c0_55] : memref<1x32xf32, #tpu.memory_space<vmem>>, vector<1x32xf32>
    %97 = vector.broadcast %96 : vector<1x32xf32> to vector<32x32xf32>
    %98 = arith.addf %95, %97 : vector<32x32xf32>
    %99 = math.tanh %98 : vector<32x32xf32>
    %c0_56 = arith.constant 0 : index
    %c0_57 = arith.constant 0 : index
    %100 = vector.load %arg12[%c0_56, %c0_57] : memref<32x16xf32, #tpu.memory_space<vmem>>, vector<32x16xf32>
    %cst_58 = arith.constant dense<0.000000e+00> : vector<32x16xf32>
    %101 = tpu.matmul %99, %100, %cst_58 {dimension_numbers = #tpu.dot_dimension_numbers<[1], [0], [0], [1], [0, 0, 1, 1], [], []>} : vector<32x32xf32>, vector<32x16xf32>, vector<32x16xf32> -> vector<32x16xf32>
    %c0_59 = arith.constant 0 : index
    %c0_60 = arith.constant 0 : index
    %102 = vector.load %arg13[%c0_59, %c0_60] : memref<1x16xf32, #tpu.memory_space<vmem>>, vector<1x16xf32>
    %103 = vector.broadcast %102 : vector<1x16xf32> to vector<32x16xf32>
    %104 = arith.addf %101, %103 : vector<32x16xf32>
    %cst_61 = arith.constant dense<0xFF800000> : vector<32xf32>
    %105 = vector.multi_reduction <maximumf>, %104, %cst_61 [1] : vector<32x16xf32> to vector<32xf32>
    %106 = vector.shape_cast %105 : vector<32xf32> to vector<32x1xf32>
    %107 = vector.broadcast %106 : vector<32x1xf32> to vector<32x16xf32>
    %108 = arith.subf %104, %107 : vector<32x16xf32>
    %109 = math.exp %108 : vector<32x16xf32>
    %cst_62 = arith.constant dense<0.000000e+00> : vector<32xf32>
    %110 = vector.multi_reduction <add>, %109, %cst_62 [1] : vector<32x16xf32> to vector<32xf32>
    %111 = vector.shape_cast %110 : vector<32xf32> to vector<32x1xf32>
    %112 = math.log %111 : vector<32x1xf32>
    %113 = vector.broadcast %106 : vector<32x1xf32> to vector<32x16xf32>
    %114 = arith.subf %104, %113 : vector<32x16xf32>
    %115 = vector.broadcast %112 : vector<32x1xf32> to vector<32x16xf32>
    %116 = arith.subf %114, %115 : vector<32x16xf32>
    %117 = vector.shape_cast %116 : vector<32x16xf32> to vector<4x8x16xf32>
    %c0_63 = arith.constant 0 : index
    %c0_64 = arith.constant 0 : index
    %c0_65 = arith.constant 0 : index
    %118 = vector.load %arg14[%c0_63, %c0_64, %c0_65] : memref<4x8x16xf32, #tpu.memory_space<vmem>>, vector<4x8x16xf32>
    tpu.vector_store %arg14[%c0_63, %c0_64, %c0_65], %117 {strides = array<i32>} : memref<4x8x16xf32, #tpu.memory_space<vmem>>, vector<4x8x16xf32>,
    %c0_66 = arith.constant 0 : index
    %c0_67 = arith.constant 0 : index
    %c0_68 = arith.constant 0 : index
    %119 = vector.load %arg15[%c0_66, %c0_67, %c0_68] : memref<4x8x16xf32, #tpu.memory_space<vmem>>, vector<4x8x16xf32>
    tpu.vector_store %arg15[%c0_66, %c0_67, %c0_68], %85 {strides = array<i32>} : memref<4x8x16xf32, #tpu.memory_space<vmem>>, vector<4x8x16xf32>,
    %c0_69 = arith.constant 0 : index
    %c0_70 = arith.constant 0 : index
    %c0_71 = arith.constant 0 : index
    %120 = vector.load %arg16[%c0_69, %c0_70, %c0_71] : memref<4x8x32xf32, #tpu.memory_space<vmem>>, vector<4x8x32xf32>
    tpu.vector_store %arg16[%c0_69, %c0_70, %c0_71], %61 {strides = array<i32>} : memref<4x8x32xf32, #tpu.memory_space<vmem>>, vector<4x8x32xf32>,
    return
  }
  func.func @transform_0(%arg0: i32) -> (i32, i32, i32) {
    %c0_i32 = arith.constant 0 : i32
    %c0_i32_0 = arith.constant 0 : i32
    %c0_i32_1 = arith.constant 0 : i32
    %c0_i32_2 = arith.constant 0 : i32
    return %c0_i32, %c0_i32_0, %c0_i32_1 : i32, i32, i32
  }
  func.func @transform_1(%arg0: i32) -> (i32, i32, i32) {
    %c0_i32 = arith.constant 0 : i32
    %c0_i32_0 = arith.constant 0 : i32
    %c0_i32_1 = arith.constant 0 : i32
    return %c0_i32, %arg0, %c0_i32_0 : i32, i32, i32
  }
  func.func @transform_2(%arg0: i32) -> (i32, i32) {
    %c0_i32 = arith.constant 0 : i32
    %c0_i32_0 = arith.constant 0 : i32
    %c0_i32_1 = arith.constant 0 : i32
    return %c0_i32, %c0_i32_0 : i32, i32
  }
  func.func @transform_3(%arg0: i32) -> (i32, i32, i32) {
    %c0_i32 = arith.constant 0 : i32
    %c0_i32_0 = arith.constant 0 : i32
    %c0_i32_1 = arith.constant 0 : i32
    %c0_i32_2 = arith.constant 0 : i32
    return %c0_i32, %c0_i32_0, %c0_i32_1 : i32, i32, i32
  }
  func.func @transform_4(%arg0: i32) -> (i32, i32, i32) {
    %c0_i32 = arith.constant 0 : i32
    %c0_i32_0 = arith.constant 0 : i32
    %c0_i32_1 = arith.constant 0 : i32
    %c0_i32_2 = arith.constant 0 : i32
    return %c0_i32, %c0_i32_0, %c0_i32_1 : i32, i32, i32
  }
  func.func @transform_5(%arg0: i32) -> (i32, i32) {
    %c0_i32 = arith.constant 0 : i32
    %c0_i32_0 = arith.constant 0 : i32
    %c0_i32_1 = arith.constant 0 : i32
    return %c0_i32, %c0_i32_0 : i32, i32
  }
  func.func @transform_6(%arg0: i32) -> (i32, i32) {
    %c0_i32 = arith.constant 0 : i32
    %c0_i32_0 = arith.constant 0 : i32
    %c0_i32_1 = arith.constant 0 : i32
    return %c0_i32, %c0_i32_0 : i32, i32
  }
  func.func @transform_7(%arg0: i32) -> (i32, i32) {
    %c0_i32 = arith.constant 0 : i32
    %c0_i32_0 = arith.constant 0 : i32
    %c0_i32_1 = arith.constant 0 : i32
    return %c0_i32, %c0_i32_0 : i32, i32
  }
  func.func @transform_8(%arg0: i32) -> (i32, i32) {
    %c0_i32 = arith.constant 0 : i32
    %c0_i32_0 = arith.constant 0 : i32
    %c0_i32_1 = arith.constant 0 : i32
    return %c0_i32, %c0_i32_0 : i32, i32
  }
  func.func @transform_9(%arg0: i32) -> (i32, i32) {
    %c0_i32 = arith.constant 0 : i32
    %c0_i32_0 = arith.constant 0 : i32
    %c0_i32_1 = arith.constant 0 : i32
    return %c0_i32, %c0_i32_0 : i32, i32
  }
  func.func @transform_10(%arg0: i32) -> (i32, i32) {
    %c0_i32 = arith.constant 0 : i32
    %c0_i32_0 = arith.constant 0 : i32
    %c0_i32_1 = arith.constant 0 : i32
    return %c0_i32, %c0_i32_0 : i32, i32
  }
  func.func @transform_11(%arg0: i32) -> (i32, i32) {
    %c0_i32 = arith.constant 0 : i32
    %c0_i32_0 = arith.constant 0 : i32
    %c0_i32_1 = arith.constant 0 : i32
    return %c0_i32, %c0_i32_0 : i32, i32
  }
  func.func @transform_12(%arg0: i32) -> (i32, i32) {
    %c0_i32 = arith.constant 0 : i32
    %c0_i32_0 = arith.constant 0 : i32
    %c0_i32_1 = arith.constant 0 : i32
    return %c0_i32, %c0_i32_0 : i32, i32
  }
  func.func @transform_13(%arg0: i32) -> (i32, i32, i32) {
    %c0_i32 = arith.constant 0 : i32
    %c0_i32_0 = arith.constant 0 : i32
    %c0_i32_1 = arith.constant 0 : i32
    return %c0_i32, %arg0, %c0_i32_0 : i32, i32, i32
  }
  func.func @transform_14(%arg0: i32) -> (i32, i32, i32) {
    %c0_i32 = arith.constant 0 : i32
    %c0_i32_0 = arith.constant 0 : i32
    %c0_i32_1 = arith.constant 0 : i32
    return %c0_i32, %arg0, %c0_i32_0 : i32, i32, i32
  }
  func.func @transform_15(%arg0: i32) -> (i32, i32, i32) {
    %c0_i32 = arith.constant 0 : i32
    %c0_i32_0 = arith.constant 0 : i32
    %c0_i32_1 = arith.constant 0 : i32
    return %c0_i32, %arg0, %c0_i32_0 : i32, i32, i32
  }
}

</mosaic_0001>

<bundles_post_ra>
// kernel: attn_decoder_forward.1
= control target key start
LH: loop header
LB: loop body
LE: loop exit
PB: predicated region body
PF: predicated region fallthrough
CT: control target
= control target key end

     0   :  { %s4003_s0 = inlined_call_operand.vmem [shape: f32[4,16,32], index: 0, kind: input, shape index: {}, may-alias: {0,1}]   ;;  %s4004_s1 = inlined_call_operand.vmem [shape: f32[4,16,32], index: 1, kind: input, shape index: {}, may-alias: {0,1}]   ;;  %s4005_s2 = inlined_call_operand.vmem [shape: f32[4,32], index: 2, kind: input, shape index: {}]   ;;  %s4006_s3 = inlined_call_operand.vmem [shape: f32[4,4,32], index: 3, kind: input, shape index: {}]   ;;  %s4007_s4 = inlined_call_operand.vmem [shape: f32[4,32,32], index: 4, kind: input, shape index: {}]   ;;  %s4008_s5 = inlined_call_operand.vmem [shape: f32[4,16], index: 5, kind: input, shape index: {}]   ;;  %s4009_s6 = inlined_call_operand.vmem [shape: f32[32,32], index: 6, kind: input, shape index: {}]   ;;  %s4010_s7 = inlined_call_operand.vmem [shape: f32[32,32], index: 7, kind: input, shape index: {}]   ;;  %s4011_s8 = inlined_call_operand.vmem [shape: f32[32,32], index: 8, kind: input, shape index: {}]   ;;  %s4012_s9 = inlined_call_operand.vmem [shape: f32[32,32], index: 9, kind: input, shape index: {}]   ;;  %s4013_s10 = inlined_call_operand.vmem [shape: f32[1,32], index: 10, kind: input, shape index: {}]   ;;  %s4014_s11 = inlined_call_operand.vmem [shape: f32[32,16], index: 11, kind: input, shape index: {}]   ;;  %s4015_s12 = inlined_call_operand.vmem [shape: f32[1,16], index: 12, kind: input, shape index: {}]   ;;  %s4016_s13 = inlined_call_operand.hbm [shape: f32[4,16,16], index: 13, kind: output, shape index: {0}]   ;;  %s4017_s14 = inlined_call_operand.vmem [shape: f32[4,16,16], index: 14, kind: output, shape index: {1}]   ;;  %s4018_s15 = inlined_call_operand.vmem [shape: f32[4,16,32], index: 15, kind: output, shape index: {2}]  }
   0x1   :  { %4021 = sst [smem:[#allocation10_spill]] %s4003_s0 }
   0x2   :  { %4022 = sst [smem:[#allocation11_spill]] %s4004_s1 }
   0x3   :  { %4023 = sst [smem:[#allocation12_spill]] %s4005_s2 }
   0x4   :  { %4024 = sst [smem:[#allocation13_spill]] %s4006_s3 }
   0x5   :  { %4025 = sst [smem:[#allocation14_spill]] %s4007_s4 }
   0x6   :  { %4026 = sst [smem:[#allocation15_spill]] %s4008_s5 }
   0x7   :  { %21 = vsyncpa [#allocation4], 0 }
   0x8   :  { %23 = vsyncpa [#allocation4 + $0x1], 0  ;;  %s3502_s18 = smov 0   ;;  %s3504_s19 = smov 0  }
   0x9   :  { %s3506_s20 = smov 0   ;;  %s3508_s21 = smov 0  }
   0xa LB: > { %4027 = sst [smem:[#allocation8_spill]] %s3409_s20  ;;  %s3523_s22 = sadd.s32 4294967295, %s3413_s21   ;;  %s3413_s21 = sphi %s3508_s21, %s4042_s21   ;;  %s3409_s20 = sphi %s3506_s20, %s4039_s20   ;;  %s3405_s19 = sphi %s3504_s19, %s4041_s19   ;;  %s3401_s18 = sphi %s3502_s18, %s4040_s18  }
   0xb   : > { %s2813_s23 = sadd.s32 4294967294, %s3413_s21   ;;  %s3527_s24 = sadd.s32 1, %s3413_s21  }
   0xc   : > { %s57_s25 = sadd.s32 1, %s3409_s20  ;;  %s54_s26 = ssub.s32 %s3413_s21, %s3527_s24 }
   0xd   : > { %p64_p0 = scmp.ne.s32.totalorder %s3409_s20, %s3405_s19  ;;  %p55_p1 = scmp.eq.s32.totalorder %s54_s26, 0 }
   0xe   : > { %p65_p2 = scmp.eq.s32.totalorder %s3413_s21, 0  ;;  %p325_p3 = scmp.eq.s32.totalorder %s3523_s22, 1 }
   0xf   : > { %p330_p4 = scmp.ne.s32.totalorder %s3405_s19, %s3401_s18  ;;  %p331_p7 = scmp.eq.s32.totalorder %s2813_s23, 1 }
  0x10   : > { %s3539_s27 = scalar_select %p55_p1, %s3409_s20, %s57_s25  }
  0x11   : > { %p66_p5 = por %p65_p2, %p64_p0  ;;  %p3541_p6 = por %p325_p3, %p64_p0 }
  0x12   : > { %4028 = sst [smem:[#allocation9_spill]] %s3539_s27  ;;  %p3545_p8 = por %p331_p7, %p330_p4 }
  0x13   : > { %p2815_p9 = scmp.ge.s32.totalorder %s3413_s21, 2 }
  0x15   : > { %435 = sbr.rel (%p2815_p9) target bundleno = 38 (0x26), region = 64 }
  0x1a   : > { %438 = sbr.rel (!%p66_p5) target bundleno = 38 (0x26), region = 68  ;;  %s440_s30 = sand.u32 (%p66_p5), 1, %s3409_s20  }
  0x1b   : > { %s2817_s16 = sshll.u32 (%p66_p5), %s3413_s21, 3  ;;  %s2816_s17 = sshll.u32 (%p66_p5), %s440_s30, 5 }
  0x1c   : > { %s4031_s1 = sld [smem:[#allocation11_spill]] (%p66_p5)  ;;  %s442_s23 = scalar_lea.vmem (%p66_p5), [#allocation2], %s2816_s17 }
  0x22   : > { %s444_s27 = scalar_lea.vmem %s4031_s1, %s2817_s16 }
  0x23   : > { %v479_v0 = vld [vmem:[%s444_s27] sm:$0xff]  ;;  %v481_v1 = vld [vmem:[%s444_s27 + $0x10] sm:$0xff] }
  0x24   : > { %v483_v2 = vld [vmem:[%s444_s27 + $0x20] sm:$0xff]  ;;  %480 = vst [vmem:[%s442_s23] sm:$0xff] %v479_v0  ;;  %482 = vst [vmem:[%s442_s23 + $0x8] sm:$0xff] %v481_v1  ;;  %v485_v3 = vld [vmem:[%s444_s27 + $0x30] sm:$0xff] }
  0x25   : > { %484 = vst [vmem:[%s442_s23 + $0x10] sm:$0xff] %v483_v2  ;;  %486 = vst [vmem:[%s442_s23 + $0x18] sm:$0xff] %v485_v3 }
  0x26 PF: > { %p2818_p10 = scmp.ge.s32.totalorder %s3413_s21, 1  ;;  %p491_p11 = scmp.lt.s32.totalorder %s3413_s21, 3 }
  0x28   : > { %p492_p12 = pnand %p2818_p10, %p491_p11 }
  0x29   : > { %s4032_s4 = sld [smem:[#allocation14_spill]] (!%p492_p12)  ;;  %s4020_s23 = sand.u32 (!%p492_p12), 1, %s3405_s19  }
  0x2a   : > { %495 = sbr.rel (%p492_p12) target bundleno = 2177 (0x881), region = 106  ;;  %s3574_s30 = sshll.u32 (!%p492_p12), %s4020_s23, 5 }
  0x2b   : > { %s500_s25 = scalar_lea.vmem (!%p492_p12), [#allocation2], %s3574_s30  ;;  %s4033_s0 = sld [smem:[#allocation10_spill]] (!%p492_p12) }
  0x2c   : > { %s4034_s3 = sld [smem:[#allocation13_spill]] (!%p492_p12)  ;;  %s3713_s26 = scalar_lea.vmem (!%p492_p12), [#allocation6], %s3574_s30 }
  0x2d   : > { %s4035_s2 = sld [smem:[#allocation12_spill]] (!%p492_p12)  ;;  %s3824_s17 = scalar_lea.vmem (!%p492_p12), [#allocation5], %s3574_s30 }
  0x2e   : > { %s4036_s5 = sld [smem:[#allocation15_spill]] (!%p492_p12)  ;;  %s540_s16 = scalar_lea.vmem (!%p492_p12), [#allocation3], %s3574_s30 }
  0x2f   : > { %v586_v4 = vld [vmem:[%s4032_s4 + $0x18] sm:$0xff]  ;;  %v585_v6 = vld [vmem:[%s4032_s4 + $0x10] sm:$0xff]  ;;  %v584_v8 = vld [vmem:[%s4032_s4 + $0x8] sm:$0xff]  ;;  %vm587_vm0 = vcmask 261120   ;;  %v3415_v29 = vmov 0.0   ;;  %v570_v33 = vlaneseq  ;;  %vm3417_vm1 = vmmov 0  }
  0x30   : > { %v2836_v5 = vld [vmem:[%s4032_s4 + $0x38] sm:$0xff]  ;;  %3014 = vmatprep.subr.mxu0 %v586_v4  ;;  %v2835_v7 = vld [vmem:[%s4032_s4 + $0x30] sm:$0xff]  ;;  %v2834_v9 = vld [vmem:[%s4032_s4 + $0x28] sm:$0xff]  ;;  %v3416_v31 = vmov 1966171168   ;;  %vm1757_vm4 = vcmask 130048  }
  0x31   : > { %3028 = vmatprep.subr.mxu1 %v2836_v5  ;;  %3015 = vmatpush3.msra.mxu0 %v586_v4  ;;  %v583_v10 = vld [vmem:[%s4032_s4] sm:$0xff]  ;;  %v554_v13 = vld [vmem:[%s500_s25 + $0x8] sm:$0xff]  ;;  %v555_v14 = vld [vmem:[%s500_s25 + $0x10] sm:$0xff]  ;;  %v568_v32 = vunpack.c.l.s4 %v3416_v31  ;;  %v571_v35 = vshrl.u32 %v570_v33, 7  ;;  %s2589_s23 = sshll.u32 %s540_s16, 4  ;;  %s3931_s23 = int_to_ptr.vmem [resolvable:$true] %s2589_s23 }
  0x32   : > { %3029 = vmatpush3.msra.mxu1 %v2836_v5  ;;  %3016 = vmatprep.subr.mxu0 %v585_v6  ;;  %v2833_v11 = vld [vmem:[%s4032_s4 + $0x20] sm:$0xff]  ;;  %v2850_v15 = vld [vmem:[%s4032_s4 + $0x58] sm:$0xff]  ;;  %v2849_v18 = vld [vmem:[%s4032_s4 + $0x50] sm:$0xff]  ;;  %s3353_s20 = scalar_lea.vmem %s3931_s23, 512 }
  0x33   : > { %3030 = vmatprep.subr.mxu1 %v2835_v7  ;;  %3017 = vmatpush3.msra.mxu0 %v585_v6  ;;  %v553_v12 = vld [vmem:[%s500_s25] sm:$0xff]  ;;  %v2860_v16 = vld [vmem:[%s4032_s4 + $0x78] sm:$0xff]  ;;  %v2859_v19 = vld [vmem:[%s4032_s4 + $0x70] sm:$0xff]  ;;  %v569_v34 = vunpack.c.0.s8 %v568_v32  ;;  %v3668_v42 = vsub.s32 0, %v571_v35  ;;  %p3354_p13 = scmp.ne.s32.totalorder %s3931_s23, %s3353_s20 }
  0x34   : > { %3031 = vmatpush3.msra.mxu1 %v2835_v7  ;;  %3018 = vmatprep.subr.mxu0 %v584_v8  ;;  %v556_v17 = vld [vmem:[%s500_s25 + $0x18] sm:$0xff]  ;;  %v2848_v20 = vld [vmem:[%s4032_s4 + $0x48] sm:$0xff]  ;;  %v2847_v22 = vld [vmem:[%s4032_s4 + $0x40] sm:$0xff]  ;;  %s2913_s25 = sshll.u32 %s3523_s22, 7 }
  0x35   : > { %3032 = vmatprep.subr.mxu1 %v2834_v9  ;;  %3019 = vmatpush3.msra.mxu0 %v584_v8  ;;  %v2858_v21 = vld [vmem:[%s4032_s4 + $0x68] sm:$0xff]  ;;  %v2857_v23 = vld [vmem:[%s4032_s4 + $0x60] sm:$0xff]  ;;  %v1277_v24 = vld [vmem:[%s4009_s6 + $0x18] sm:$0xff]  ;;  %v3665_v38 = vsub.s32 %v569_v34, %v571_v35  ;;  %p3355_p0 = pnand %p3354_p13, %p3541_p6 }
  0x36   : > { %3033 = vmatpush3.msra.mxu1 %v2834_v9  ;;  %3020 = vmatprep.subr.mxu0 %v583_v10  ;;  %v1276_v25 = vld [vmem:[%s4009_s6 + $0x10] sm:$0xff]  ;;  %v1275_v26 = vld [vmem:[%s4009_s6 + $0x8] sm:$0xff]  ;;  %v1274_v27 = vld [vmem:[%s4009_s6] sm:$0xff] }
  0x37   : > { %3034 = vmatprep.subr.mxu1 %v2833_v11  ;;  %3021 = vmatpush3.msra.mxu0 %v583_v10  ;;  %v3644_v28 = vld [vmem:[%s4033_s0 + $0x8] sm:$0xff]  ;;  %v3654_v30 = vld [vmem:[%s4033_s0] sm:$0xff]  ;;  %p3356_p1 = pneg %p3355_p0 }
  0x38   : > { %3022 = vmatprep.mubr.msk.f32.mxu0 %vm587_vm0, %v553_v12  ;;  %3035 = vmatpush3.msra.mxu1 %v2833_v11  ;;  %v2828_v36 = vld.sshfl [vmem:[%s4034_s3] sm:$0x33 pattern:$0x75316420] }
  0x39   : > { %3036 = vmatprep.mubr.msk.f32.mxu1 %vm587_vm0, %v553_v12  ;;  %3023 = vmatmul.mubr.msk.f32.vlgmr.msra.gmra.mxu0 %vm587_vm0, %v554_v13  ;;  %v2842_v37 = vld.sshfl [vmem:[%s4034_s3 + $0x4] sm:$0x33 pattern:$0x75316420]  ;;  %v694_v39 = vcombine.high %v2828_v36, %v2828_v36  ;;  %v701_v44 = vrot.slane %v2828_v36, %v3665_v38 }
  0x3a   : > { %3037 = vmatmul.mubr.msk.f32.vlgmr.msra.gmra.mxu1 %vm587_vm0, %v554_v13  ;;  %3025 = vmatprep.mubr.msk.f32.mxu0 %vm587_vm0, %v555_v14  ;;  %v859_v40 = vcombine.high %v2842_v37, %v2842_v37  ;;  %v866_v45 = vrot.slane %v2842_v37, %v3665_v38  ;;  %v2856_v46 = vld.sshfl [vmem:[%s4034_s3 + $0x8] sm:$0x33 pattern:$0x75316420] }
  0x3b   : > { %3039 = vmatprep.mubr.msk.f32.mxu1 %vm587_vm0, %v555_v14  ;;  %3042 = vmatprep.subr.mxu0 %v2850_v15  ;;  %v708_v41 = vrot.slane %v694_v39, %v3665_v38  ;;  %v2866_v50 = vld.sshfl [vmem:[%s4034_s3 + $0xc] sm:$0x33 pattern:$0x75316420]  ;;  %v709_v52 = vcombine.high %v701_v44, %v701_v44  ;;  %v714_v54 = vrot.slane %v701_v44, %v3668_v42  ;;  %s3418_s3 = smov [#allocation3]  }
  0x3c   : > { %3056 = vmatprep.subr.mxu1 %v2860_v16  ;;  %3043 = vmatpush3.msra.mxu0 %v2850_v15  ;;  %v873_v43 = vrot.slane %v859_v40, %v3665_v38  ;;  %v874_v53 = vcombine.high %v866_v45, %v866_v45  ;;  %v879_v55 = vrot.slane %v866_v45, %v3668_v42  ;;  %s3357_s4 = sshll.u32 %s3418_s3, 4  ;;  %s3358_s4 = int_to_ptr.vmem [resolvable:$false] %s3357_s4 }
  0x3d   : > { %3057 = vmatpush3.msra.mxu1 %v2860_v16  ;;  %3026 = vmatmul.mubr.msk.f32.gmra.mxu0 %vm587_vm0, %v556_v17  ;;  %v718_v47 = vrot.slane %v708_v41, %v3668_v42  ;;  %v710_v49 = vcombine.high %v708_v41, %v708_v41  ;;  %v1024_v58 = vcombine.high %v2856_v46, %v2856_v46  ;;  %p3360_p2 = scmp.lt.s32.totalorder %s3931_s23, %s3358_s4 }
  0x3e   : > { %3040 = vmatmul.mubr.msk.f32.gmra.mxu1 %vm587_vm0, %v556_v17  ;;  %3044 = vmatprep.subr.mxu0 %v2849_v18  ;;  %v883_v48 = vrot.slane %v873_v43, %v3668_v42  ;;  %v875_v51 = vcombine.high %v873_v43, %v873_v43  ;;  %v1169_v59 = vcombine.high %v2866_v50, %v2866_v50 }
  0x3f   : > { %3058 = vmatprep.subr.mxu1 %v2859_v19  ;;  %3045 = vmatpush3.msra.mxu0 %v2849_v18  ;;  %v726_v62 = vrot.slane %v710_v49, %v3668_v42  ;;  %v722_v2 = vrot.slane %v709_v52, %v3668_v42  ;;  %v887_v3 = vrot.slane %v874_v53, %v3668_v42 }
  0x40   : > { %3059 = vmatpush3.msra.mxu1 %v2859_v19  ;;  %3046 = vmatprep.subr.mxu0 %v2848_v20  ;;  %v891_v1 = vrot.slane %v875_v51, %v3668_v42  ;;  %v1038_v10 = vrot.slane %v1024_v58, %v3665_v38  ;;  %v1183_v11 = vrot.slane %v1169_v59, %v3665_v38 }
  0x41   : > { %3060 = vmatprep.subr.mxu1 %v2858_v21  ;;  %3047 = vmatpush3.msra.mxu0 %v2848_v20  ;;  %v1031_v18 = vrot.slane %v2856_v46, %v3665_v38  ;;  %v1176_v19 = vrot.slane %v2866_v50, %v3665_v38 }
  0x42   : > { %3061 = vmatpush3.msra.mxu1 %v2858_v21  ;;  %3048 = vmatprep.subr.mxu0 %v2847_v22  ;;  %v1040_v31 = vcombine.high %v1038_v10, %v1038_v10  ;;  %v1185_v40 = vcombine.high %v1183_v11, %v1183_v11 }
  0x43   : > { %3062 = vmatprep.subr.mxu1 %v2857_v23  ;;  %3049 = vmatpush3.msra.mxu0 %v2847_v22  ;;  %v1044_v32 = vrot.slane %v1031_v18, %v3668_v42  ;;  %v1189_v33 = vrot.slane %v1176_v19, %v3668_v42 }
  0x44   : > { %3050 = vmatprep.mubr.msk.f32.mxu0 %vm587_vm0, %v553_v12  ;;  %3063 = vmatpush3.msra.mxu1 %v2857_v23  ;;  %v1056_v39 = vrot.slane %v1040_v31, %v3668_v42  ;;  %v1201_v52 = vrot.slane %v1185_v40, %v3668_v42 }
  0x45   : > { %3064 = vmatprep.mubr.msk.f32.mxu1 %vm587_vm0, %v553_v12  ;;  %3051 = vmatmul.mubr.msk.f32.vlgmr.msra.gmra.mxu0 %vm587_vm0, %v554_v13 }
  0x46   : > { %3065 = vmatmul.mubr.msk.f32.vlgmr.msra.gmra.mxu1 %vm587_vm0, %v554_v13  ;;  %3053 = vmatprep.mubr.msk.f32.mxu0 %vm587_vm0, %v555_v14 }
  0x47   : > { %3067 = vmatprep.mubr.msk.f32.mxu1 %vm587_vm0, %v555_v14  ;;  %3070 = vmatprep.subr.mxu0 %v1277_v24 }
  0x48   : > { %3071 = vmatpush3.msra.mxu0 %v1277_v24  ;;  %3084 = vmatprep.subr.mxu1 %v3415_v29  ;;  %v1048_v24 = vrot.slane %v1038_v10, %v3668_v42 }
  0x49   : > { %3054 = vmatmul.mubr.msk.f32.gmra.mxu0 %vm587_vm0, %v556_v17  ;;  %3072 = vmatprep.subr.mxu0 %v1276_v25 }
  0x4a   : > { %3068 = vmatmul.mubr.msk.f32.gmra.mxu1 %vm587_vm0, %v556_v17  ;;  %3073 = vmatpush3.msra.mxu0 %v1276_v25  ;;  %v1193_v25 = vrot.slane %v1183_v11, %v3668_v42 }
  0x4b   : > { %3074 = vmatprep.subr.mxu0 %v1275_v26  ;;  %3085 = vmatpush3.xpose.msk.msra.mxu1 %vm587_vm0, %v3644_v28 }
  0x4c   : > { %3075 = vmatpush3.msra.mxu0 %v1275_v26  ;;  %3086 = vmatprep.subr.mxu1 %v3415_v29 }
  0x4d   : > { %3076 = vmatprep.subr.mxu0 %v1274_v27  ;;  %3088 = vmatprep.mubr.msk.f32.mxu1 %vm3417_vm1, %v3415_v29 }
  0x4e   : > { %3077 = vmatpush3.msra.mxu0 %v1274_v27 }
  0x4f   : > { %3091 = vmatprep.subr.mxu0 %v3415_v29  ;;  %3087 = vmatpush3.xpose.msk.msra.mxu1 %vm587_vm0, %v3654_v30 }
  0x50   : > { %3098 = vmatprep.subr.mxu1 %v3415_v29 }
  0xf9   : > { %v3024_v56 = vpop.f32.mrf.mxu0 }
  0xfa   : > { %v3038_v57 = vpop.f32.mrf.mxu1  ;;  %v732_v60 = vadd.f32 %v3024_v56, %v718_v47  ;;  %v1184_v47 = vcombine.high %v1176_v19, %v1176_v19 }
  0xfb   : > { %v897_v61 = vadd.f32 %v3038_v57, %v883_v48  ;;  %v666_v63 = vpop.f32.mrf.mxu0 }
  0xfc   : > { %v830_v0 = vpop.f32.mrf.mxu1  ;;  %v2830_v4 = vmul.f32 -1.442695, %v732_v60  ;;  %v731_v6 = vadd.f32 %v714_v54, %v666_v63  ;;  %v1039_v54 = vcombine.high %v1031_v18, %v1031_v18  ;;  %v1197_v57 = vrot.slane %v1184_v47, %v3668_v42  ;;  %v2823_v63 = vld.sshfl [vmem:[%s4035_s2] sm:$0x33 pattern:$0x75316420] }
  0xfd   : > { %v2844_v5 = vmul.f32 -1.442695, %v897_v61  ;;  %v896_v7 = vadd.f32 %v879_v55, %v830_v0  ;;  %v3027_v8 = vpop.f32.mrf.mxu0  ;;  %v566_v10 = vcombine.high %v2823_v63, %v2823_v63  ;;  %s4037_s2 = sand.u32 1, %s3405_s19  }
  0xfe   : > { %v3041_v9 = vpop.f32.mrf.mxu1  ;;  %3241 = vpow2.f32 %v2830_v4  ;;  %v2829_v12 = vmul.f32 -1.442695, %v731_v6  ;;  %v734_v14 = vadd.f32 %v3027_v8, %v726_v62  ;;  %s3942_s1 = scalar_lea.sflag [#allocation4], %s4037_s2 }
  0xff   : > { %v2843_v13 = vmul.f32 -1.442695, %v896_v7  ;;  %3243 = vpow2.f32 %v2844_v5  ;;  %v899_v15 = vadd.f32 %v3041_v9, %v891_v1  ;;  %v676_v16 = vpop.f32.mrf.mxu0 }
 0x100   : > { %v840_v17 = vpop.f32.mrf.mxu1  ;;  %3245 = vpow2.f32 %v2829_v12  ;;  %v2832_v20 = vmul.f32 -1.442695, %v734_v14  ;;  %v733_v21 = vadd.f32 %v722_v2, %v676_v16 }
 0x101   : > { %v898_v22 = vadd.f32 %v887_v3, %v840_v17  ;;  %3247 = vpow2.f32 %v2843_v13  ;;  %v2846_v23 = vmul.f32 -1.442695, %v899_v15  ;;  %v1052_v3 = vrot.slane %v1039_v54, %v3668_v42 }
 0x102   : > { %3249 = vpow2.f32 %v2832_v20  ;;  %v2831_v26 = vmul.f32 -1.442695, %v733_v21  ;;  %v580_v17 = vrot.slane %v566_v10, %v3665_v38  ;;  %v573_v20 = vrot.slane %v2823_v63, %v3665_v38  ;;  %v3741_v10 = vld [vmem:[%s4033_s0 + $0x10] sm:$0xff] }
 0x103   : > { %v2845_v27 = vmul.f32 -1.442695, %v898_v22  ;;  %3251 = vpow2.f32 %v2846_v23 }
 0x104   : > { %3253 = vpow2.f32 %v2831_v26  ;;  %v1241_v23 = vrot.slane %v580_v17, %v3668_v42  ;;  %v1237_v31 = vrot.slane %v573_v20, %v3668_v42 }
 0x105   : > { %3255 = vpow2.f32 %v2845_v27  ;;  %v3052_v34 = vpop.f32.mrf.mxu0 }
 0x106   : > { %v3066_v35 = vpop.f32.mrf.mxu1  ;;  %v1062_v36 = vadd.f32 %v3052_v34, %v1048_v24  ;;  %v582_v24 = vcombine.high %v580_v17, %v580_v17  ;;  %v1379_v17 = vld [vmem:[%s4033_s0 + $0x20] sm:$0xff] }
 0x107   : > { %v1207_v37 = vadd.f32 %v3066_v35, %v1193_v25  ;;  %v995_v41 = vpop.f32.mrf.mxu0 }
 0x108   : > { %v1140_v43 = vpop.f32.mrf.mxu1  ;;  %v1061_v45 = vadd.f32 %v1044_v32, %v995_v41  ;;  %3257 = vtanh.f32 %v1062_v36  ;;  %v581_v32 = vcombine.high %v573_v20, %v573_v20  ;;  %v2887_v20 = vld.sshfl [vmem:[%s4036_s5] sm:$0x33 pattern:$0x75316420]  ;;  %s3359_s5 = scalar_lea.vmem %s3358_s4, 1024 }
 0x109   : > { %v2868_v44 = vmul.f32 -1.442695, %v1207_v37  ;;  %v1206_v46 = vadd.f32 %v1189_v33, %v1140_v43  ;;  %v3055_v48 = vpop.f32.mrf.mxu0  ;;  %v1249_v37 = vrot.slane %v582_v24, %v3668_v42  ;;  %p3361_p3 = scmp.lt.s32.totalorder %s3359_s5, %s3353_s20 }
 0x10a   : > { %v3069_v49 = vpop.f32.mrf.mxu1  ;;  %v1064_v51 = vadd.f32 %v3055_v48, %v1056_v39 }
 0x10b   : > { %3259 = vpow2.f32 %v2868_v44  ;;  %v2867_v50 = vmul.f32 -1.442695, %v1206_v46  ;;  %v3242_v53 = vpop.eup %3241  ;;  %v1209_v0 = vadd.f32 %v3069_v49, %v1201_v52  ;;  %v1005_v6 = vpop.f32.mrf.mxu0  ;;  %v1245_v46 = vrot.slane %v581_v32, %v3668_v42  ;;  %p3362_p4 = por %p3361_p3, %p3360_p2 }
 0x10c   : > { %3261 = vtanh.f32 %v1061_v45  ;;  %v3244_v55 = vpop.eup %3243  ;;  %v748_v56 = vadd.f32 1.0, %v3242_v53  ;;  %v1150_v60 = vpop.f32.mrf.mxu1  ;;  %v1063_v15 = vadd.f32 %v1052_v3, %v1005_v6 }
 0x10d   : > { %3263 = vpow2.f32 %v2867_v50  ;;  %v3246_v58 = vpop.eup %3245  ;;  %v913_v59 = vadd.f32 1.0, %v3244_v55  ;;  %v1208_v7 = vadd.f32 %v1197_v57, %v1150_v60  ;;  %v2870_v13 = vmul.f32 -1.442695, %v1209_v0  ;;  %p3363_p5 = pnand %p3362_p4, %p3356_p1 }
 0x10e   : > { %3265 = vtanh.f32 %v1064_v51  ;;  %v3248_v61 = vpop.eup %3247  ;;  %v747_v62 = vadd.f32 1.0, %v3246_v58 }
 0x10f   : > { %3267 = vrcp.f32 %v748_v56  ;;  %v3250_v1 = vpop.eup %3249  ;;  %v912_v2 = vadd.f32 1.0, %v3248_v61  ;;  %v2869_v16 = vmul.f32 -1.442695, %v1208_v7 }
 0x110   : > { %3269 = vrcp.f32 %v913_v59  ;;  %v3252_v4 = vpop.eup %3251  ;;  %v750_v5 = vadd.f32 1.0, %v3250_v1 }
 0x111   : > { %3271 = vrcp.f32 %v747_v62  ;;  %v3254_v8 = vpop.eup %3253  ;;  %v915_v9 = vadd.f32 1.0, %v3252_v4 }
 0x112   : > { %3273 = vrcp.f32 %v912_v2  ;;  %v3256_v11 = vpop.eup %3255  ;;  %v749_v12 = vadd.f32 1.0, %v3254_v8 }
 0x113   : > { %3275 = vrcp.f32 %v750_v5  ;;  %v914_v14 = vadd.f32 1.0, %v3256_v11  ;;  %v3721_v5 = vld [vmem:[%s4033_s0 + $0x18] sm:$0xff] }
 0x114   : > { %3277 = vrcp.f32 %v915_v9 }
 0x115   : > { %3279 = vrcp.f32 %v749_v12  ;;  %v3258_v18 = vpop.eup %3257  ;;  %v3762_v12 = vld [vmem:[%s4033_s0 + $0x38] sm:$0xff] }
 0x116   : > { %3281 = vrcp.f32 %v914_v14  ;;  %v1380_v14 = vld [vmem:[%s4033_s0 + $0x28] sm:$0xff] }
 0x117   : > { %3283 = vpow2.f32 %v2870_v13 }
 0x118   : > { %v3260_v19 = vpop.eup %3259  ;;  %3285 = vtanh.f32 %v1063_v15 }
 0x119   : > { %v3262_v21 = vpop.eup %3261  ;;  %3287 = vpow2.f32 %v2869_v16  ;;  %v1223_v27 = vadd.f32 1.0, %v3260_v19  ;;  %v3777_v16 = vld [vmem:[%s4033_s0 + $0x30] sm:$0xff]  ;;  %s3936_s0 = scalar_lea.hbm %s4016_s13, %s2913_s25 }
 0x11a   : > { %v3264_v22 = vpop.eup %3263 }
 0x11b   : > { %v3266_v25 = vpop.eup %3265  ;;  %v1222_v41 = vadd.f32 1.0, %v3264_v22  ;;  %3289 = vrcp.f32 %v1223_v27 }
 0x11c   : > { %v3268_v26 = vpop.eup %3267 }
 0x11d   : > { %v3270_v33 = vpop.eup %3269  ;;  %v1259_v34 = vmul.f32 %v3268_v26, %v3258_v18 }
 0x11e   : > { %v3272_v35 = vpop.eup %3271  ;;  %v1255_v36 = vmul.f32 %v3270_v33, %v1241_v23  ;;  %v1715_v23 = vrot.slane %v2887_v20, %v3665_v38 }
 0x11f   : > { %v3274_v39 = vpop.eup %3273  ;;  %v1258_v40 = vmul.f32 %v3272_v35, %v3262_v21  ;;  %v1708_v21 = vcombine.high %v2887_v20, %v2887_v20 }
 0x120   : > { %v3276_v43 = vpop.eup %3275  ;;  %v1263_v44 = vadd.f32 %v1259_v34, %v1255_v36  ;;  %v1254_v45 = vmul.f32 %v3274_v39, %v1237_v31  ;;  %v1728_v24 = vrot.slane %v1715_v23, %v3668_v42  ;;  %v1723_v33 = vcombine.high %v1715_v23, %v1715_v23 }
 0x121   : > { %v3278_v47 = vpop.eup %3277  ;;  %v1261_v48 = vmul.f32 %v3276_v43, %v3266_v25  ;;  %v1722_v22 = vrot.slane %v1708_v21, %v3665_v38 }
 0x122   : > { %v3280_v49 = vpop.eup %3279  ;;  %3291 = vtanh.f32 %v1263_v44  ;;  %v1262_v50 = vadd.f32 %v1258_v40, %v1254_v45  ;;  %v1257_v51 = vmul.f32 %v3278_v47, %v1249_v37  ;;  %v1736_v37 = vrot.slane %v1723_v33, %v3668_v42 }
 0x123   : > { %v3282_v52 = vpop.eup %3281  ;;  %3293 = vrcp.f32 %v1222_v41  ;;  %v1724_v27 = vcombine.high %v1722_v22, %v1722_v22 }
 0x124   : > { %v3284_v53 = vpop.eup %3283  ;;  %3295 = vtanh.f32 %v1262_v50  ;;  %v1265_v54 = vadd.f32 %v1261_v48, %v1257_v51  ;;  %v1256_v55 = vmul.f32 %v3282_v52, %v1245_v46 }
 0x125   : > { %v3286_v56 = vpop.eup %3285  ;;  %v1225_v57 = vadd.f32 1.0, %v3284_v53  ;;  %v1740_v35 = vrot.slane %v1724_v27, %v3668_v42  ;;  %v2094_v27 = vld [vmem:[%s4010_s7] sm:$0xff] }
 0x126   : > { %v3288_v58 = vpop.eup %3287  ;;  %3297 = vtanh.f32 %v1265_v54  ;;  %v1260_v59 = vmul.f32 %v3286_v56, %v3280_v49 }
 0x127   : > { %3299 = vrcp.f32 %v1225_v57  ;;  %v1224_v60 = vadd.f32 1.0, %v3288_v58 }
 0x128   : > { %v1264_v61 = vadd.f32 %v1260_v59, %v1256_v55  ;;  %v3290_v62 = vpop.eup %3289 }
 0x129   : > { %3301 = vrcp.f32 %v1224_v60 }
 0x12a   : > { %3303 = vtanh.f32 %v1264_v61 }
 0x12f   : > { %v3292_v63 = vpop.eup %3291 }
 0x130   : > { %v3294_v0 = vpop.eup %3293  ;;  %v3708_v1 = vmul.f32 %v3292_v63, %v3290_v62 }
 0x131   : > { %v3296_v2 = vpop.eup %3295 }
 0x132   : > { %v3710_v3 = vmul.f32 %v3296_v2, %v3294_v0  ;;  %2565 = vst.msk [vmem:[%s3713_s26 + $0x8] sm:$0xff] %vm587_vm0, %v3708_v1 }
 0x133   : > { %v3298_v4 = vpop.eup %3297 }
 0x134   : > { %v3300_v6 = vpop.eup %3299  ;;  %3078 = vmatprep.mubr.msk.f32.mxu0 %vm587_vm0, %v3710_v3  ;;  %2564 = vst.msk [vmem:[%s3713_s26] sm:$0xff] %vm587_vm0, %v3710_v3 }
 0x135   : > { %3079 = vmatmul.mubr.msk.f32.vlgmr.msra.gmra.mxu0 %vm587_vm0, %v3708_v1  ;;  %v3730_v7 = vmul.f32 %v3300_v6, %v3298_v4 }
 0x136   : > { %v3302_v8 = vpop.eup %3301  ;;  %3092 = vmatpush3.xpose.msk.msra.mxu0 %vm587_vm0, %v3721_v5 }
 0x137   : > { %v3304_v9 = vpop.eup %3303  ;;  %2567 = vst.msk [vmem:[%s3713_s26 + $0x18] sm:$0xff] %vm587_vm0, %v3730_v7  ;;  %3093 = vmatprep.subr.mxu0 %v3415_v29 }
 0x138   : > { %v3743_v11 = vmul.f32 %v3304_v9, %v3302_v8 }
 0x13a   : > { %3081 = vmatprep.mubr.msk.f32.mxu0 %vm587_vm0, %v3743_v11  ;;  %2566 = vst.msk [vmem:[%s3713_s26 + $0x10] sm:$0xff] %vm587_vm0, %v3743_v11  ;;  %3094 = vmatpush3.xpose.msk.msra.mxu0 %vm587_vm0, %v3741_v10 }
 0x13b   : > { %3082 = vmatmul.mubr.msk.f32.gmra.mxu0 %vm587_vm0, %v3730_v7  ;;  %3105 = vmatprep.subr.mxu0 %v3415_v29 }
 0x13c   : > { %3095 = vmatprep.mubr.msk.f32.mxu0 %vm3417_vm1, %v3415_v29 }
 0x1f5   : > { %v3080_v13 = vpop.f32.mrf.mxu0 }
 0x1f6   : > { %3096 = vmatmul.mubr.msk.f32.vlgmr.msra.gmra.mxu0 %vm587_vm0, %v3080_v13 }
 0x1f7   : > { %3106 = vmatpush3.xpose.msk.msra.mxu0 %vm587_vm0, %v3762_v12  ;;  %v1356_v15 = vpop.f32.mrf.mxu0  ;;  %3109 = vmatprep.mubr.msk.f32.mxu0 %vm3417_vm1, %v3415_v29 }
 0x1f8   : > { %3089 = vmatmul.mubr.msk.f32.vlgmr.msra.gmra.mxu1 %vm587_vm0, %v1356_v15  ;;  %3107 = vmatprep.subr.mxu0 %v3415_v29 }
 0x1f9   : > { %3099 = vmatpush3.xpose.msk.msra.mxu1 %vm587_vm0, %v1380_v14  ;;  %3102 = vmatprep.mubr.msk.f32.mxu1 %vm3417_vm1, %v3415_v29 }
 0x1fa   : > { %3100 = vmatprep.subr.mxu1 %v3415_v29 }
 0x1fb   : > { %v3083_v18 = vpop.f32.mrf.mxu0  ;;  %3108 = vmatpush3.xpose.msk.msra.mxu0 %vm587_vm0, %v3777_v16 }
 0x1fc   : > { %3126 = vmatprep.subr.mxu0 %v3415_v29 }
 0x1fd   : > { %3101 = vmatpush3.xpose.msk.msra.mxu1 %vm587_vm0, %v1379_v17  ;;  %v1366_v19 = vpop.f32.mrf.mxu0 }
 0x1fe   : > { %3110 = vmatmul.mubr.msk.f32.vlgmr.msra.gmra.mxu0 %vm587_vm0, %v3083_v18  ;;  %3112 = vmatprep.subr.mxu1 %v3415_v29 }
 0x1ff   : > { %3127 = vmatpush3.msra.mxu0 %v1380_v14  ;;  %3130 = vmatprep.mubr.msk.f32.mxu0 %vm3417_vm1, %v3415_v29  ;;  %v2101_v14 = vld [vmem:[%s4011_s8 + $0x18] sm:$0xff] }
 0x200   : > { %3103 = vmatmul.mubr.msk.f32.vlgmr.msra.gmra.mxu1 %vm587_vm0, %v1366_v19  ;;  %3128 = vmatprep.subr.mxu0 %v3415_v29 }
 0x201   : > { %3113 = vmatpush3.msra.mxu1 %v3644_v28  ;;  %3116 = vmatprep.mubr.msk.f32.mxu1 %vm3417_vm1, %v3415_v29  ;;  %v1732_v28 = vrot.slane %v1722_v22, %v3668_v42 }
 0x202   : > { %3114 = vmatprep.subr.mxu1 %v3415_v29  ;;  %3129 = vmatpush3.msra.mxu0 %v1379_v17 }
 0x203   : > { %3115 = vmatpush3.msra.mxu1 %v3654_v30  ;;  %3140 = vmatprep.subr.mxu0 %v2101_v14 }
 0x204   : > { %3119 = vmatprep.subr.mxu1 %v3415_v29 }
 0x2b6   : > { %v1537_v25 = vpop.f32.mrf.mxu0 }
 0x2b7   : > { %v1746_v26 = vmul.f32 %v1732_v28, %v1537_v25 }
 0x2b8   : > { %v1458_v31 = vpop.f32.mrf.mxu1  ;;  %v3097_v30 = vpop.f32.mrf.mxu0 }
 0x2b9   : > { %v1745_v32 = vmul.f32 %v1728_v24, %v1458_v31  ;;  %vm1750_vm3 = vcmp.eq.f32.partialorder %v1746_v26, 0.0 }
 0x2ba   : > { %v3090_v34 = vpop.f32.mrf.mxu1  ;;  %v1754_v40 = vsel %vm1750_vm3, -1e+10, %v1746_v26  ;;  %v2096_v26 = vld [vmem:[%s4010_s7 + $0x10] sm:$0xff] }
 0x2bb   : > { %vm1749_vm2 = vcmp.eq.f32.partialorder %v1745_v32, 0.0  ;;  %v1761_v46 = vsel %vm1757_vm4, %v1754_v40, -inf }
 0x2bc   : > { %v1753_v36 = vsel %vm1749_vm2, -1e+10, %v1745_v32 }
 0x2bd   : > { %v1758_v38 = vsel %vm1757_vm4, %v1753_v36, -inf }
 0x2be   : > { %v1695_v39 = vpop.f32.mrf.mxu0  ;;  %1759 = vmax.xlane.f32.xlu0 %v1758_v38  ;;  %v2289_v38 = vld [vmem:[%s4012_s9 + $0x8] sm:$0xff] }
 0x2bf   : > { %v1748_v41 = vmul.f32 %v1740_v35, %v1695_v39  ;;  %v2291_v35 = vld [vmem:[%s4012_s9 + $0x18] sm:$0xff] }
 0x2c0   : > { %v1616_v43 = vpop.f32.mrf.mxu1  ;;  %v3111_v44 = vpop.f32.mrf.mxu0 }
 0x2c1   : > { %v1747_v45 = vmul.f32 %v1736_v37, %v1616_v43  ;;  %vm1752_vm6 = vcmp.eq.f32.partialorder %v1748_v41, 0.0  ;;  %v2288_v37 = vld [vmem:[%s4012_s9] sm:$0xff] }
 0x2c2   : > { %v3104_v47 = vpop.f32.mrf.mxu1  ;;  %1762 = vmax.xlane.f32.xlu0 %v1761_v46  ;;  %v1756_v50 = vsel %vm1752_vm6, -1e+10, %v1748_v41 }
 0x2c3   : > { %vm1751_vm5 = vcmp.eq.f32.partialorder %v1747_v45, 0.0  ;;  %v1767_v42 = vsel %vm1757_vm4, %v1756_v50, -inf }
 0x2c4   : > { %v1755_v48 = vsel %vm1751_vm5, -1e+10, %v1747_v45 }
 0x2c5   : > { %v1764_v49 = vsel %vm1757_vm4, %v1755_v48, -inf }
 0x2c6   : > { %1765 = vmax.xlane.f32.xlu1 %v1764_v49 }
 0x2ca   : > { %1768 = vmax.xlane.f32.xlu1 %v1767_v42 }
 0x347   : > { %v1760_v51 = vpop.xlane.xlu0 %1759 }
 0x348   : > { %v1770_v52 = vsub.f32 %v1753_v36, %v1760_v51  ;;  %v2290_v36 = vld [vmem:[%s4012_s9 + $0x10] sm:$0xff] }
 0x34a   : > { %v1774_v53 = vmul.f32 1.442695, %v1770_v52 }
 0x34b   : > { %v1763_v54 = vpop.xlane.xlu0 %1762 }
 0x34c   : > { %3305 = vpow2.f32 %v1774_v53  ;;  %v1771_v55 = vsub.f32 %v1754_v40, %v1763_v54 }
 0x34e   : > { %v1776_v56 = vmul.f32 1.442695, %v1771_v55  ;;  %v2403_v55 = vld [vmem:[%s4014_s11 + $0x18] sm:$0xff] }
 0x34f   : > { %v1766_v57 = vpop.xlane.xlu1 %1765 }
 0x350   : > { %3307 = vpow2.f32 %v1776_v56  ;;  %v1772_v58 = vsub.f32 %v1755_v48, %v1766_v57  ;;  %v2402_v56 = vld [vmem:[%s4014_s11 + $0x10] sm:$0xff]  ;;  %v2401_v57 = vld [vmem:[%s4014_s11 + $0x8] sm:$0xff] }
 0x352   : > { %v1778_v59 = vmul.f32 1.442695, %v1772_v58  ;;  %v2400_v58 = vld [vmem:[%s4014_s11] sm:$0xff] }
 0x353   : > { %v1769_v60 = vpop.xlane.xlu1 %1768 }
 0x354   : > { %3309 = vpow2.f32 %v1778_v59  ;;  %v1773_v61 = vsub.f32 %v1756_v50, %v1769_v60  ;;  %v2900_v59 = vld [vmem:[%s4013_s10] ss:$0 sm:$0xff] }
 0x356   : > { %v1780_v62 = vmul.f32 1.442695, %v1773_v61 }
 0x358   : > { %3311 = vpow2.f32 %v1780_v62 }
 0x359   : > { %v3306_v63 = vpop.eup %3305 }
 0x35a   : > { %v1782_v0 = vsel %vm1757_vm4, %v3306_v63, 0.0 }
 0x35b   : > { %1783 = vadd.xlane.f32.xlu0 %v1782_v0 }
 0x35d   : > { %v3308_v2 = vpop.eup %3307 }
 0x35e   : > { %v1785_v4 = vsel %vm1757_vm4, %v3308_v2, 0.0 }
 0x35f   : > { %1786 = vadd.xlane.f32.xlu1 %v1785_v4 }
 0x361   : > { %v3310_v6 = vpop.eup %3309 }
 0x362   : > { %v1788_v8 = vsel %vm1757_vm4, %v3310_v6, 0.0 }
 0x363   : > { %1789 = vadd.xlane.f32.xlu0 %v1788_v8 }
 0x365   : > { %v3312_v9 = vpop.eup %3311 }
 0x366   : > { %v1791_v13 = vsel %vm1757_vm4, %v3312_v9, 0.0 }
 0x367   : > { %1792 = vadd.xlane.f32.xlu1 %v1791_v13 }
 0x3e4   : > { %v1784_v15 = vpop.xlane.xlu0 %1783 }
 0x3e5   : > { %3313 = vrcp.f32 %v1784_v15  ;;  %v2905_v15 = vld [vmem:[%s4015_s12] ss:$0 sm:$0xff] }
 0x3e8   : > { %v1787_v17 = vpop.xlane.xlu1 %1786 }
 0x3e9   : > { %3315 = vrcp.f32 %v1787_v17 }
 0x3ec   : > { %v1790_v18 = vpop.xlane.xlu0 %1789 }
 0x3ed   : > { %3317 = vrcp.f32 %v1790_v18 }
 0x3f0   : > { %v1793_v19 = vpop.xlane.xlu1 %1792 }
 0x3f1   : > { %3319 = vrcp.f32 %v1793_v19 }
 0x3f2   : > { %v3314_v20 = vpop.eup %3313 }
 0x3f3   : > { %v1798_v21 = vmul.f32 %v3314_v20, %v3306_v63 }
 0x3f5   : > { %3117 = vmatmul.mubr.msk.f32.vlgmr.msra.gmra.mxu1 %vm1757_vm4, %v1798_v21  ;;  %2560 = vst.msk [vmem:[%s3824_s17] sm:$0xff] %vm1757_vm4, %v1798_v21 }
 0x3f6   : > { %v3316_v22 = vpop.eup %3315  ;;  %3120 = vmatpush3.msra.mxu1 %v3721_v5  ;;  %3123 = vmatprep.mubr.msk.f32.mxu1 %vm3417_vm1, %v3415_v29  ;;  %v2097_v5 = vld [vmem:[%s4010_s7 + $0x18] sm:$0xff] }
 0x3f7   : > { %3121 = vmatprep.subr.mxu1 %v3415_v29  ;;  %v1799_v23 = vmul.f32 %v3316_v22, %v3308_v2 }
 0x3f8   : > { %3122 = vmatpush3.msra.mxu1 %v3741_v10  ;;  %v2100_v10 = vld [vmem:[%s4011_s8 + $0x10] sm:$0xff] }
 0x3f9   : > { %3124 = vmatmul.mubr.msk.f32.vlgmr.msra.gmra.mxu1 %vm1757_vm4, %v1799_v23  ;;  %2561 = vst.msk [vmem:[%s3824_s17 + $0x8] sm:$0xff] %vm1757_vm4, %v1799_v23  ;;  %3133 = vmatprep.subr.mxu1 %v3415_v29 }
 0x3fa   : > { %v3318_v28 = vpop.eup %3317  ;;  %3134 = vmatpush3.msra.mxu1 %v3762_v12  ;;  %3137 = vmatprep.mubr.msk.f32.mxu1 %vm3417_vm1, %v3415_v29 }
 0x3fb   : > { %v1800_v24 = vmul.f32 %v3318_v28, %v3310_v6  ;;  %3135 = vmatprep.subr.mxu1 %v3415_v29  ;;  %v2099_v29 = vld [vmem:[%s4011_s8 + $0x8] sm:$0xff] }
 0x3fc   : > { %3136 = vmatpush3.msra.mxu1 %v3777_v16  ;;  %v2098_v16 = vld [vmem:[%s4011_s8] sm:$0xff] }
 0x3fd   : > { %3131 = vmatmul.mubr.msk.f32.vlgmr.msra.gmra.mxu0 %vm1757_vm4, %v1800_v24  ;;  %2562 = vst.msk [vmem:[%s3824_s17 + $0x10] sm:$0xff] %vm1757_vm4, %v1800_v24  ;;  %3154 = vmatprep.subr.mxu1 %v2097_v5 }
 0x3fe   : > { %v3320_v12 = vpop.eup %3319  ;;  %3141 = vmatpush3.msra.mxu0 %v2101_v14  ;;  %3148 = vmatprep.mubr.msk.f32.mxu0 %vm587_vm0, %v3710_v3  ;;  %v2095_v3 = vld [vmem:[%s4010_s7 + $0x8] sm:$0xff] }
 0x3ff   : > { %3142 = vmatprep.subr.mxu0 %v2100_v10  ;;  %v1801_v25 = vmul.f32 %v3320_v12, %v3312_v9 }
 0x400   : > { %3143 = vmatpush3.msra.mxu0 %v2100_v10 }
 0x401   : > { %3144 = vmatprep.subr.mxu0 %v2099_v29  ;;  %3138 = vmatmul.mubr.msk.f32.vlgmr.msra.gmra.mxu1 %vm1757_vm4, %v1801_v25  ;;  %2563 = vst.msk [vmem:[%s3824_s17 + $0x18] sm:$0xff] %vm1757_vm4, %v1801_v25 }
 0x402   : > { %3145 = vmatpush3.msra.mxu0 %v2099_v29  ;;  %3155 = vmatpush3.msra.mxu1 %v2097_v5 }
 0x403   : > { %3146 = vmatprep.subr.mxu0 %v2098_v16  ;;  %3156 = vmatprep.subr.mxu1 %v2096_v26 }
 0x404   : > { %3147 = vmatpush3.msra.mxu0 %v2098_v16  ;;  %3157 = vmatpush3.msra.mxu1 %v2096_v26 }
 0x405   : > { %3149 = vmatmul.mubr.msk.f32.vlgmr.msra.gmra.mxu0 %vm587_vm0, %v3708_v1  ;;  %3158 = vmatprep.subr.mxu1 %v2095_v3 }
 0x406   : > { %3151 = vmatprep.mubr.msk.f32.mxu0 %vm587_vm0, %v3743_v11  ;;  %3159 = vmatpush3.msra.mxu1 %v2095_v3 }
 0x407   : > { %3160 = vmatprep.subr.mxu1 %v2094_v27  ;;  %3168 = vmatprep.subr.mxu0 %v2291_v35 }
 0x408   : > { %3161 = vmatpush3.msra.mxu1 %v2094_v27  ;;  %3169 = vmatpush3.msra.mxu0 %v2291_v35 }
 0x409   : > { %3152 = vmatmul.mubr.msk.f32.gmra.mxu0 %vm587_vm0, %v3730_v7  ;;  %3170 = vmatprep.subr.mxu0 %v2290_v36 }
 0x40a   : > { %3171 = vmatpush3.msra.mxu0 %v2290_v36  ;;  %3182 = vmatprep.subr.mxu1 %v2403_v55 }
 0x40b   : > { %3172 = vmatprep.subr.mxu0 %v2289_v38 }
 0x40c   : > { %3173 = vmatpush3.msra.mxu0 %v2289_v38 }
 0x40d   : > { %3174 = vmatprep.subr.mxu0 %v2288_v37 }
 0x40e   : > { %3175 = vmatpush3.msra.mxu0 %v2288_v37 }
 0x4b5   : > { %v1871_v31 = vpop.f32.mrf.mxu1 }
 0x4b6   : > { %3162 = vmatprep.mubr.msk.f32.mxu1 %vm587_vm0, %v1871_v31 }
 0x4b7   : > { %v3118_v1 = vpop.f32.mrf.mxu1 }
 0x4b9   : > { %v1944_v11 = vpop.f32.mrf.mxu1 }
 0x4ba   : > { %3163 = vmatmul.mubr.msk.f32.vlgmr.msra.gmra.mxu1 %vm587_vm0, %v1944_v11 }
 0x4bb   : > { %v3125_v7 = vpop.f32.mrf.mxu1  ;;  %3183 = vmatpush3.msra.mxu1 %v2403_v55 }
 0x4bc   : > { %3184 = vmatprep.subr.mxu1 %v2402_v56 }
 0x4bd   : > { %v2017_v30 = vpop.f32.mrf.mxu0  ;;  %3185 = vmatpush3.msra.mxu1 %v2402_v56 }
 0x4be   : > { %3165 = vmatprep.mubr.msk.f32.mxu1 %vm587_vm0, %v2017_v30  ;;  %3186 = vmatprep.subr.mxu1 %v2401_v57 }
 0x4bf   : > { %v3132_v32 = vpop.f32.mrf.mxu0  ;;  %3187 = vmatpush3.msra.mxu1 %v2401_v57 }
 0x4c0   : > { %3188 = vmatprep.subr.mxu1 %v2400_v58 }
 0x4c1   : > { %v2090_v33 = vpop.f32.mrf.mxu1  ;;  %3189 = vmatpush3.msra.mxu1 %v2400_v58 }
 0x4c2   : > { %3166 = vmatmul.mubr.msk.f32.gmra.mxu1 %vm587_vm0, %v2090_v33 }
 0x4c3   : > { %v3139_v34 = vpop.f32.mrf.mxu1 }
 0x4c5   : > { %v3150_v39 = vpop.f32.mrf.mxu0 }
 0x4c7   : > { %v2168_v41 = vpop.f32.mrf.mxu0 }
 0x4c9   : > { %v3153_v46 = vpop.f32.mrf.mxu0 }
 0x4cb   : > { %v2178_v48 = vpop.f32.mrf.mxu0 }
 0x57a   : > { %v3164_v40 = vpop.f32.mrf.mxu1 }
 0x57b   : > { %v2271_v43 = vadd.f32 %v3164_v40, %v3150_v39 }
 0x57c   : > { %v2265_v44 = vpop.f32.mrf.mxu1 }
 0x57d   : > { %v2266_v45 = vadd.f32 %v2265_v44, %v2168_v41 }
 0x57f   : > { %3321 = vtanh.f32 %v2266_v45 }
 0x580   : > { %3323 = vtanh.f32 %v2271_v43 }
 0x582   : > { %v3167_v47 = vpop.f32.mrf.mxu1 }
 0x583   : > { %v2281_v49 = vadd.f32 %v3167_v47, %v3153_v46 }
 0x584   : > { %v2275_v50 = vpop.f32.mrf.mxu1 }
 0x585   : > { %v2276_v42 = vadd.f32 %v2275_v50, %v2178_v48 }
 0x587   : > { %3325 = vtanh.f32 %v2276_v42 }
 0x588   : > { %3327 = vtanh.f32 %v2281_v49 }
 0x58c   : > { %v3322_v51 = vpop.eup %3321 }
 0x58d   : > { %v3324_v52 = vpop.eup %3323  ;;  %3176 = vmatprep.mubr.msk.f32.mxu0 %vm587_vm0, %v3322_v51 }
 0x58e   : > { %3177 = vmatmul.mubr.msk.f32.vlgmr.msra.gmra.mxu0 %vm587_vm0, %v3324_v52 }
 0x594   : > { %v3326_v53 = vpop.eup %3325 }
 0x595   : > { %v3328_v54 = vpop.eup %3327  ;;  %3179 = vmatprep.mubr.msk.f32.mxu0 %vm587_vm0, %v3326_v53 }
 0x596   : > { %3180 = vmatmul.mubr.msk.f32.gmra.mxu0 %vm587_vm0, %v3328_v54 }
 0x64e   : > { %v3178_v60 = vpop.f32.mrf.mxu0 }
 0x64f   : > { %v2383_v61 = vadd.f32 %v3178_v60, %v2900_v59 }
 0x650   : > { %v2377_v62 = vpop.f32.mrf.mxu0 }
 0x651   : > { %v2378_v63 = vadd.f32 %v2900_v59, %v2377_v62 }
 0x653   : > { %3329 = vtanh.f32 %v2378_v63 }
 0x654   : > { %3331 = vtanh.f32 %v2383_v61 }
 0x656   : > { %v3181_v0 = vpop.f32.mrf.mxu0 }
 0x657   : > { %v2393_v2 = vadd.f32 %v3181_v0, %v2900_v59 }
 0x658   : > { %v2387_v4 = vpop.f32.mrf.mxu0 }
 0x659   : > { %v2388_v6 = vadd.f32 %v2900_v59, %v2387_v4 }
 0x65b   : > { %3333 = vtanh.f32 %v2388_v6 }
 0x65c   : > { %3335 = vtanh.f32 %v2393_v2 }
 0x660   : > { %v3330_v8 = vpop.eup %3329 }
 0x661   : > { %v3332_v9 = vpop.eup %3331  ;;  %3190 = vmatprep.mubr.msk.f32.mxu1 %vm587_vm0, %v3330_v8 }
 0x662   : > { %3191 = vmatmul.mubr.msk.f32.vlgmr.msra.gmra.mxu1 %vm587_vm0, %v3332_v9 }
 0x668   : > { %v3334_v13 = vpop.eup %3333 }
 0x669   : > { %v3336_v14 = vpop.eup %3335  ;;  %3193 = vmatprep.mubr.msk.f32.mxu1 %vm587_vm0, %v3334_v13 }
 0x66a   : > { %3194 = vmatmul.mubr.msk.f32.gmra.mxu1 %vm587_vm0, %v3336_v14 }
 0x722   : > { %v3192_v17 = vpop.f32.mrf.mxu1 }
 0x723   : > { %v2495_v18 = vadd.f32 %v3192_v17, %v2905_v15 }
 0x724   : > { %v2489_v19 = vpop.f32.mrf.mxu1 }
 0x725   : > { %v2490_v20 = vadd.f32 %v2905_v15, %v2489_v19  ;;  %v2511_v21 = vsel %vm1757_vm4, %v2495_v18, -inf }
 0x726   : > { %2512 = vmax.xlane.f32.xlu1 %v2511_v21 }
 0x727   : > { %v2508_v22 = vsel %vm1757_vm4, %v2490_v20, -inf }
 0x728   : > { %2509 = vmax.xlane.f32.xlu0 %v2508_v22 }
 0x72a   : > { %v3195_v23 = vpop.f32.mrf.mxu1 }
 0x72b   : > { %v2505_v28 = vadd.f32 %v3195_v23, %v2905_v15 }
 0x72c   : > { %v2499_v5 = vpop.f32.mrf.mxu1 }
 0x72d   : > { %v2500_v24 = vadd.f32 %v2905_v15, %v2499_v5  ;;  %v2517_v10 = vsel %vm1757_vm4, %v2505_v28, -inf }
 0x72e   : > { %2518 = vmax.xlane.f32.xlu1 %v2517_v10 }
 0x72f   : > { %v2514_v12 = vsel %vm1757_vm4, %v2500_v24, -inf }
 0x730   : > { %2515 = vmax.xlane.f32.xlu0 %v2514_v12 }
 0x7af   : > { %v2513_v29 = vpop.xlane.xlu1 %2512 }
 0x7b0   : > { %v2521_v25 = vsub.f32 %v2495_v18, %v2513_v29 }
 0x7b1   : > { %v2510_v16 = vpop.xlane.xlu0 %2509 }
 0x7b2   : > { %v2526_v26 = vmul.f32 1.442695, %v2521_v25  ;;  %v2520_v3 = vsub.f32 %v2490_v20, %v2510_v16 }
 0x7b4   : > { %3337 = vpow2.f32 %v2526_v26  ;;  %v2524_v27 = vmul.f32 1.442695, %v2520_v3 }
 0x7b6   : > { %3339 = vpow2.f32 %v2524_v27 }
 0x7b7   : > { %v2519_v31 = vpop.xlane.xlu1 %2518 }
 0x7b8   : > { %v2523_v1 = vsub.f32 %v2505_v28, %v2519_v31 }
 0x7b9   : > { %v2516_v11 = vpop.xlane.xlu0 %2515 }
 0x7ba   : > { %v2530_v7 = vmul.f32 1.442695, %v2523_v1  ;;  %v2522_v30 = vsub.f32 %v2500_v24, %v2516_v11 }
 0x7bc   : > { %3341 = vpow2.f32 %v2530_v7  ;;  %v2528_v32 = vmul.f32 1.442695, %v2522_v30 }
 0x7be   : > { %3343 = vpow2.f32 %v2528_v32 }
 0x7c1   : > { %v3338_v33 = vpop.eup %3337 }
 0x7c2   : > { %v2535_v34 = vsel %vm1757_vm4, %v3338_v33, 0.0 }
 0x7c3   : > { %v3340_v35 = vpop.eup %3339  ;;  %2536 = vadd.xlane.f32.xlu1 %v2535_v34 }
 0x7c4   : > { %v2532_v36 = vsel %vm1757_vm4, %v3340_v35, 0.0 }
 0x7c5   : > { %2533 = vadd.xlane.f32.xlu0 %v2532_v36 }
 0x7c9   : > { %v3342_v38 = vpop.eup %3341 }
 0x7ca   : > { %v2541_v37 = vsel %vm1757_vm4, %v3342_v38, 0.0 }
 0x7cb   : > { %v3344_v39 = vpop.eup %3343  ;;  %2542 = vadd.xlane.f32.xlu1 %v2541_v37 }
 0x7cc   : > { %v2538_v40 = vsel %vm1757_vm4, %v3344_v39, 0.0 }
 0x7cd   : > { %2539 = vadd.xlane.f32.xlu0 %v2538_v40 }
 0x84c   : > { %v2537_v41 = vpop.xlane.xlu1 %2536 }
 0x84d   : > { %3345 = vlog2.f32 %v2537_v41 }
 0x84e   : > { %v2534_v43 = vpop.xlane.xlu0 %2533 }
 0x84f   : > { %3347 = vlog2.f32 %v2534_v43 }
 0x854   : > { %v2543_v44 = vpop.xlane.xlu1 %2542 }
 0x855   : > { %3349 = vlog2.f32 %v2543_v44 }
 0x856   : > { %v2540_v45 = vpop.xlane.xlu0 %2539 }
 0x857   : > { %3351 = vlog2.f32 %v2540_v45 }
 0x85a   : > { %v3346_v46 = vpop.eup %3345 }
 0x85b   : > { %v2547_v47 = vmul.f32 0.6931472, %v3346_v46 }
 0x85c   : > { %v3348_v48 = vpop.eup %3347 }
 0x85d   : > { %v2553_v49 = vsub.f32 %v2521_v25, %v2547_v47  ;;  %v2545_v50 = vmul.f32 0.6931472, %v3348_v48 }
 0x85f   : > { %2557 = vst.msk [vmem:[%s540_s16 + $0x8] sm:$0xff] %vm1757_vm4, %v2553_v49  ;;  %v2552_v42 = vsub.f32 %v2520_v3, %v2545_v50 }
 0x861   : > { %2556 = vst.msk [vmem:[%s540_s16] sm:$0xff] %vm1757_vm4, %v2552_v42 }
 0x862   : > { %v3350_v51 = vpop.eup %3349 }
 0x863   : > { %v2551_v52 = vmul.f32 0.6931472, %v3350_v51 }
 0x864   : > { %v3352_v53 = vpop.eup %3351 }
 0x865   : > { %v2555_v54 = vsub.f32 %v2523_v1, %v2551_v52  ;;  %v2549_v55 = vmul.f32 0.6931472, %v3352_v53 }
 0x867   : > { %2559 = vst.msk [vmem:[%s540_s16 + $0x18] sm:$0xff] %vm1757_vm4, %v2555_v54  ;;  %v2554_v56 = vsub.f32 %v2522_v30, %v2549_v55 }
 0x869   : > { %2558 = vst.msk [vmem:[%s540_s16 + $0x10] sm:$0xff] %vm1757_vm4, %v2554_v56 }
 0x86a   : > { %3366 = shalt.err (!%p3363_p5)
}
 0x86b   : > { %s3367_s16 = scalar_lea.hbm %s3936_s0, 512  ;;  %s3371_s3 = scalar_lea.hbm %s4016_s13, 1024 }
 0x86c   : > { %p3368_p7 = scmp.ne.s32.totalorder %s3936_s0, %s3367_s16  ;;  %p3372_p12 = scmp.lt.s32.totalorder %s3936_s0, %s4016_s13 }
 0x86d   : > { %p3373_p13 = scmp.lt.s32.totalorder %s3371_s3, %s3367_s16 }
 0x86e   : > { %p3369_p10 = pnand %p3368_p7, %p3541_p6 }
 0x86f   : > { %p3374_p0 = por %p3373_p13, %p3372_p12 }
 0x870   : > { %p3370_p11 = pneg %p3369_p10 }
 0x872   : > { %p3375_p1 = pnand %p3374_p0, %p3370_p11 }
 0x874   : > { %3378 = shalt.err (!%p3375_p1)
}
 0x875   : > { %s3419_s4 = smov 128   ;;  %s3420_s5 = smov 256   ;;  %v2635_v57 = vld [vmem:[%s3824_s17] sm:$0xff] (%p3541_p6)  ;;  %v2637_v58 = vld [vmem:[%s3824_s17 + $0x8] sm:$0xff] (%p3541_p6)  ;;  %v2639_v59 = vld [vmem:[%s3824_s17 + $0x10] sm:$0xff] (%p3541_p6) }
 0x876   : > { %s3421_s20 = smov 8   ;;  %2598 = sbr.rel (!%p3541_p6) target bundleno = 2172 (0x87c), region = 118  ;;  %v2641_v60 = vld [vmem:[%s3824_s17 + $0x18] sm:$0xff] (%p3541_p6) }
 0x877   : > { %3196 = dma.vmem_to_hbm [thread:$0]  (%p3541_p6), %s3931_s23, 512, %s3936_s0, %s3942_s1, %s3419_s4, %s3420_s5, %s3421_s20  }
 0x878   : > { %s2914_s16 = sshll.u32 (%p3541_p6), %s3523_s22, 3 }
 0x879   : > { %s2600_s3 = scalar_lea.vmem (%p3541_p6), %s4017_s14, %s2914_s16 }
 0x87a   : > { %2636 = vst [vmem:[%s2600_s3] sm:$0xff] (%p3541_p6), %v2635_v57  ;;  %2638 = vst [vmem:[%s2600_s3 + $0x10] sm:$0xff] (%p3541_p6), %v2637_v58 }
 0x87b   : > { %2640 = vst [vmem:[%s2600_s3 + $0x20] sm:$0xff] %v2639_v59  ;;  %2642 = vst [vmem:[%s2600_s3 + $0x30] sm:$0xff] %v2641_v60 }
 0x87c PF: > { %2648 = sbr.rel (!%p3541_p6) target bundleno = 2177 (0x881), region = 156  ;;  %s2915_s23 = sshll.u32 (%p3541_p6), %s3523_s22, 3  ;;  %v2685_v61 = vld [vmem:[%s3713_s26] sm:$0xff] (%p3541_p6)  ;;  %v2687_v62 = vld [vmem:[%s3713_s26 + $0x8] sm:$0xff] (%p3541_p6)  ;;  %v2689_v63 = vld [vmem:[%s3713_s26 + $0x10] sm:$0xff] (%p3541_p6) }
 0x87d   : > { %s2650_s17 = scalar_lea.vmem (%p3541_p6), %s4018_s15, %s2915_s23  ;;  %v2691_v0 = vld [vmem:[%s3713_s26 + $0x18] sm:$0xff] (%p3541_p6) }
 0x87e   : > { %2686 = vst [vmem:[%s2650_s17] sm:$0xff] (%p3541_p6), %v2685_v61  ;;  %2688 = vst [vmem:[%s2650_s17 + $0x10] sm:$0xff] (%p3541_p6), %v2687_v62 }
 0x87f   : > { %2690 = vst [vmem:[%s2650_s17 + $0x20] sm:$0xff] (%p3541_p6), %v2689_v63  ;;  %2692 = vst [vmem:[%s2650_s17 + $0x30] sm:$0xff] (%p3541_p6), %v2691_v0 }
 0x881 PF: > { %s2704_s28 = sand.u32 1, %s3401_s18   ;;  %p3199_p6 = pnand %p2815_p9, %p3545_p8 }
 0x882   : > { %s2705_s22 = scalar_lea.sflag [#allocation4], %s2704_s28 }
 0x883   : > { %p3200_p2 = pneg %p3199_p6 }
 0x885   : > { %3396 = dma.done.wait (%p3200_p2), %s2705_s22, 512  }
 0x886   : > { %3398 = vsyncadd (%p3200_p2), %s2705_s22, 4294966784  ;;  %s4038_s26 = sld [smem:[#allocation8_spill]]  ;;  %p26_p3 = scmp.ge.s32.totalorder %s3527_s24, 4  }
 0x887   : > { %s4039_s20 = sld [smem:[#allocation9_spill]]  ;;  %s4040_s18 = smov %s3405_s19 }
 0x888   : > { %s4042_s21 = smov %s3527_s24  ;;  %28 = sbr.rel (!%p26_p3) target bundleno = 10 (0xa), region = 256 }
 0x88c   : > { %s4041_s19 = smov %s4038_s26 }
 0x88d   :  { %2724 = vsyncpa [#allocation4], 1 }
 0x88e   :  { %2726 = vsyncpa [#allocation4 + $0x1], 1 }

</bundles_post_ra>
